<compile_context>
chip_gen: v6e
topology: v6e:2x2x1
jax: 0.10.0
libtpu: 0.0.40
codegen_flags: <defaults>
</compile_context>

<pallas_src>
import math
import functools

import jax
import jax.numpy as jnp
from jax import lax
from jax.experimental import pallas as pl
from jax.experimental.pallas import tpu as pltpu

# ----------------------------- mini-CLIP config ------------------------------
IMG_SIZE = 16
PATCH = 8
IN_CH = 3
VISION_WIDTH = 32
TEXT_WIDTH = 32
EMBED_DIM = 32          # visual.output_dim (== vision_projection in/out dim)
N_HEADS = 4
HEAD_DIM = VISION_WIDTH // N_HEADS
N_LAYERS = 2
VOCAB = 64
CONTEXT_LEN = 8
EPS = 1e-5
NEG_INF = -1e9


# ----------------------------- in-kernel helpers ------------------------------
def _ln(x, g, b):
    mean = jnp.mean(x, axis=-1, keepdims=True)
    var = jnp.mean((x - mean) ** 2, axis=-1, keepdims=True)
    return (x - mean) * lax.rsqrt(var + EPS) * g + b


# ------------------------------ fused kernels ---------------------------------
def _transformer_kernel(x_ref,
                        ln1_g_ref, ln1_b_ref, wi_ref, bi_ref, wo_ref, bo_ref,
                        ln2_g_ref, ln2_b_ref, w1_ref, b1_ref, w2_ref, b2_ref,
                        o_ref, *, causal, n_heads, head_dim):
    """One CLIP residual block per grid step; activations stay resident in the
    output VMEM block across the whole layer sweep of a batch element."""
    # Layer 0: seed the resident activation tile from the embedded input.
    @pl.when(pl.program_id(1) == 0)
    def _():
        o_ref[0] = x_ref[0]

    x = o_ref[0]                                  # [S, W]
    S, W = x.shape

    # ---- attention branch --------------------------------------------------
    h = _ln(x, ln1_g_ref[0], ln1_b_ref[0])
    qkv = jnp.dot(h, wi_ref[0],
                  preferred_element_type=jnp.float32) + bi_ref[0]      # [S, 3W]
    scale = 1.0 / math.sqrt(head_dim)
    q = qkv[:, 0:W] * scale                       # fold 1/sqrt(Dh) into q once
    k = qkv[:, W:2 * W]
    v = qkv[:, 2 * W:3 * W]

    if causal:
        row = lax.broadcasted_iota(jnp.int32, (S, S), 0)
        col = lax.broadcasted_iota(jnp.int32, (S, S), 1)
        causal_bias = jnp.where(col > row, NEG_INF, 0.0).astype(jnp.float32)

    w_out = wo_ref[0]                             # [W, W]
    attn = jnp.zeros((S, W), jnp.float32)
    for hh in range(n_heads):                     # static unrolled head loop
        lo, hi = hh * head_dim, (hh + 1) * head_dim
        s = lax.dot_general(q[:, lo:hi], k[:, lo:hi],
                            (((1,), (1,)), ((), ())),
                            preferred_element_type=jnp.float32)        # [S, S]
        if causal:
            s = s + causal_bias
        s = s - jnp.max(s, axis=-1, keepdims=True)
        p = jnp.exp(s)
        p = p * pl.reciprocal(jnp.sum(p, axis=-1, keepdims=True), approx=True)
        oh = jnp.dot(p, v[:, lo:hi],
                     preferred_element_type=jnp.float32)               # [S, Dh]
        # fold out-projection into the head loop: concat_h(oh) @ W_out
        attn = attn + jnp.dot(oh, w_out[lo:hi, :],
                              preferred_element_type=jnp.float32)
    x = x + attn + bo_ref[0]                      # residual + out-proj bias

    # ---- MLP branch ----------------------------------------------------------
    h = _ln(x, ln2_g_ref[0], ln2_b_ref[0])
    h = jnp.dot(h, w1_ref[0],
                preferred_element_type=jnp.float32) + b1_ref[0]
    h = h * jax.nn.sigmoid(1.702 * h)             # CLIP QuickGELU
    h = jnp.dot(h, w2_ref[0],
                preferred_element_type=jnp.float32) + b2_ref[0]
    o_ref[0] = x + h


def _vision_embed_kernel(p_ref, w_ref, cls_ref, pos_ref, g_ref, b_ref, o_ref):
    """Patch embedding + class token + positional embedding + ln_pre, fused."""
    # p_ref[0]: [S, C*p*p] with row 0 zero-padded (class-token slot)
    emb = jnp.dot(p_ref[0], w_ref[...],
                  preferred_element_type=jnp.float32)                  # [S, W]
    S = emb.shape[0]
    is_cls = (lax.broadcasted_iota(jnp.int32, (S, 1), 0) == 0).astype(jnp.float32)
    x = emb + is_cls * cls_ref[...] + pos_ref[...]
    o_ref[0] = _ln(x, g_ref[...], b_ref[...])


def _ln_proj_kernel(x_ref, g_ref, b_ref, w_ref, o_ref):
    """Final LayerNorm + (bias-free) projection, fused."""
    h = _ln(x_ref[...], g_ref[...], b_ref[...])
    o_ref[...] = jnp.dot(h, w_ref[...], preferred_element_type=jnp.float32)


# ------------------------------ kernel wrappers --------------------------------
def _layer_vec_spec(c):
    # stacked per-layer vector: array (L, 1, c), block (1, 1, c) -> layer l
    return pl.BlockSpec((1, 1, c), lambda b, l: (l, 0, 0))


def _layer_mat_spec(r, c):
    # stacked per-layer matrix: array (L, r, c), block (1, r, c) -> layer l
    return pl.BlockSpec((1, r, c), lambda b, l: (l, 0, 0))


def _rep_spec(shape):
    """BlockSpec for a weight replicated across the (batch-only) grid."""
    zeros = (0,) * len(shape)
    return pl.BlockSpec(shape, lambda b: zeros)


def _stack_vec(blocks, name):
    return jnp.stack([blk[name].reshape(1, -1) for blk in blocks], axis=0)


def _stack_mat(blocks, name):
    return jnp.stack([blk[name] for blk in blocks], axis=0)


def transformer_stack(x, blocks, causal):
    """All residual blocks of one encoder in a single pallas_call."""
    B, S, W = x.shape
    L = len(blocks)
    kern = functools.partial(_transformer_kernel, causal=causal,
                             n_heads=N_HEADS, head_dim=HEAD_DIM)
    return pl.pallas_call(
        kern,
        out_shape=jax.ShapeDtypeStruct((B, S, W), jnp.float32),
        grid=(B, L),
        in_specs=[
            pl.BlockSpec((1, S, W), lambda b, l: (b, 0, 0)),      # embedded x
            _layer_vec_spec(W), _layer_vec_spec(W),               # ln1
            _layer_mat_spec(W, 3 * W), _layer_vec_spec(3 * W),    # qkv proj
            _layer_mat_spec(W, W), _layer_vec_spec(W),            # out proj
            _layer_vec_spec(W), _layer_vec_spec(W),               # ln2
            _layer_mat_spec(W, 4 * W), _layer_vec_spec(4 * W),    # fc1
            _layer_mat_spec(4 * W, W), _layer_vec_spec(W),        # fc2
        ],
        out_specs=pl.BlockSpec((1, S, W), lambda b, l: (b, 0, 0)),
        compiler_params=pltpu.CompilerParams(
            dimension_semantics=("parallel", "arbitrary")),
    )(x,
      _stack_vec(blocks, "ln1_g"), _stack_vec(blocks, "ln1_b"),
      _stack_mat(blocks, "attn_in_w"), _stack_vec(blocks, "attn_in_b"),
      _stack_mat(blocks, "attn_out_w"), _stack_vec(blocks, "attn_out_b"),
      _stack_vec(blocks, "ln2_g"), _stack_vec(blocks, "ln2_b"),
      _stack_mat(blocks, "fc1_w"), _stack_vec(blocks, "fc1_b"),
      _stack_mat(blocks, "fc2_w"), _stack_vec(blocks, "fc2_b"))


def vision_embed(patches_padded, vp):
    B, S, Kp = patches_padded.shape
    W = VISION_WIDTH
    return pl.pallas_call(
        _vision_embed_kernel,
        out_shape=jax.ShapeDtypeStruct((B, S, W), jnp.float32),
        grid=(B,),
        in_specs=[
            pl.BlockSpec((1, S, Kp), lambda b: (b, 0, 0)),
            _rep_spec((Kp, W)),
            _rep_spec((1, W)),
            _rep_spec((S, W)),
            _rep_spec((1, W)),
            _rep_spec((1, W)),
        ],
        out_specs=pl.BlockSpec((1, S, W), lambda b: (b, 0, 0)),
        compiler_params=pltpu.CompilerParams(
            dimension_semantics=("parallel",)),
    )(patches_padded, vp["patch_w"], vp["class_emb"].reshape(1, W),
      vp["pos_emb"], vp["ln_pre_g"].reshape(1, W), vp["ln_pre_b"].reshape(1, W))


def ln_proj(x, g, b, w):
    M, D = x.shape
    E = w.shape[1]
    return pl.pallas_call(
        _ln_proj_kernel,
        out_shape=jax.ShapeDtypeStruct((M, E), jnp.float32),
        grid=(1,),
        in_specs=[pl.BlockSpec((M, D), lambda i: (0, 0)),
                  pl.BlockSpec((1, D), lambda i: (0, 0)),
                  pl.BlockSpec((1, D), lambda i: (0, 0)),
                  pl.BlockSpec((D, E), lambda i: (0, 0))],
        out_specs=pl.BlockSpec((M, E), lambda i: (0, 0)),
    )(x, g.reshape(1, D), b.reshape(1, D), w)


# -------------------------------- encoders ------------------------------------
def encode_image(images, vp):
    B, C, H, W_ = images.shape
    gh, gw = H // PATCH, W_ // PATCH
    # conv(kernel=stride=patch, no bias) == patch unfold + matmul.
    # Patch layout is channel-major per patch, matching Conv2d weight [width,C,p,p].
    patches = images.reshape(B, C, gh, PATCH, gw, PATCH)
    patches = patches.transpose(0, 2, 4, 1, 3, 5).reshape(B, gh * gw, C * PATCH * PATCH)
    # Prepend a zero patch row: row 0 becomes the class-token slot inside the kernel.
    patches = jnp.pad(patches, ((0, 0), (1, 0), (0, 0)))

    x = vision_embed(patches, vp)                         # [B, S, W], ln_pre applied
    x = transformer_stack(x, vp["blocks"], causal=False)  # all layers, one launch

    cls_tok = x[:, 0, :]
    return ln_proj(cls_tok, vp["ln_post_g"], vp["ln_post_b"], vp["proj"])


def encode_text(tokens, tp):
    B, T = tokens.shape
    x = jnp.take(tp["token_emb"], tokens, axis=0) + tp["pos_emb"][None]
    x = transformer_stack(x, tp["blocks"], causal=True)
    # LayerNorm is per-token, so pooling the EOT token before ln_final is
    # mathematically identical to ln_final-then-pool (CLIP order).
    eot = jnp.argmax(tokens, axis=-1)                     # CLIP: EOT has the largest id
    pooled = x[jnp.arange(B), eot]
    return ln_proj(pooled, tp["ln_final_g"], tp["ln_final_b"], tp["text_proj"])


def _streetclip_forward(images, tokens, params):
    # == StreetCLIP.forward: (encode_image(images), encode_text(texts)), cast to
    # the dtype of self.vision_projection.weight.
    img_feats = encode_image(images, params["visual"])
    txt_feats = encode_text(tokens, params["text"])
    wdtype = params["vision_projection_w"].dtype
    return img_feats.astype(wdtype), txt_feats.astype(wdtype)


streetclip_forward = jax.jit(_streetclip_forward)


# --------------------------- pure-JAX reference --------------------------------
def _ref_ln(x, g, b):
    mean = x.mean(-1, keepdims=True)
    var = ((x - mean) ** 2).mean(-1, keepdims=True)
    return (x - mean) / jnp.sqrt(var + EPS) * g + b


def _ref_block(x, p, causal):
    B, S, W = x.shape
    h = _ref_ln(x, p["ln1_g"], p["ln1_b"])
    qkv = h @ p["attn_in_w"] + p["attn_in_b"]
    q, k, v = jnp.split(qkv, 3, axis=-1)
    q = q.reshape(B, S, N_HEADS, HEAD_DIM).transpose(0, 2, 1, 3)
    k = k.reshape(B, S, N_HEADS, HEAD_DIM).transpose(0, 2, 1, 3)
    v = v.reshape(B, S, N_HEADS, HEAD_DIM).transpose(0, 2, 1, 3)
    s = jnp.einsum("bhqd,bhkd->bhqk", q, k) / math.sqrt(HEAD_DIM)
    if causal:
        s = s + jnp.triu(jnp.full((S, S), NEG_INF, jnp.float32), k=1)
    pr = jax.nn.softmax(s, axis=-1)
    o = jnp.einsum("bhqk,bhkd->bhqd", pr, v).transpose(0, 2, 1, 3).reshape(B, S, W)
    x = x + o @ p["attn_out_w"] + p["attn_out_b"]
    h = _ref_ln(x, p["ln2_g"], p["ln2_b"])
    h = h @ p["fc1_w"] + p["fc1_b"]
    h = h * jax.nn.sigmoid(1.702 * h)
    h = h @ p["fc2_w"] + p["fc2_b"]
    return x + h


def _ref_encode_image(images, vp):
    B, C, H, W_ = images.shape
    gh, gw = H // PATCH, W_ // PATCH
    patches = images.reshape(B, C, gh, PATCH, gw, PATCH)
    patches = patches.transpose(0, 2, 4, 1, 3, 5).reshape(B, gh * gw, C * PATCH * PATCH)
    emb = patches @ vp["patch_w"]
    cls = jnp.broadcast_to(vp["class_emb"], (B, 1, VISION_WIDTH))
    x = jnp.concatenate([cls, emb], axis=1) + vp["pos_emb"][None]
    x = _ref_ln(x, vp["ln_pre_g"], vp["ln_pre_b"])
    for blk in vp["blocks"]:
        x = _ref_block(x, blk, causal=False)
    return _ref_ln(x[:, 0], vp["ln_post_g"], vp["ln_post_b"]) @ vp["proj"]


def _ref_encode_text(tokens, tp):
    B = tokens.shape[0]
    x = tp["token_emb"][tokens] + tp["pos_emb"][None]
    for blk in tp["blocks"]:
        x = _ref_block(x, blk, causal=True)
    x = _ref_ln(x, tp["ln_final_g"], tp["ln_final_b"])
    pooled = x[jnp.arange(B), jnp.argmax(tokens, axis=-1)]
    return pooled @ tp["text_proj"]


# ------------------------------ parameter init --------------------------------
def init_params(key):
    keys = iter(jax.random.split(key, 256))

    def nrm(shape, scale=0.02):
        return (scale * jax.random.normal(next(keys), shape)).astype(jnp.float32)

    def block_params(width):
        return dict(
            ln1_g=jnp.ones((width,), jnp.float32), ln1_b=jnp.zeros((width,), jnp.float32),
            attn_in_w=nrm((width, 3 * width)), attn_in_b=jnp.zeros((3 * width,), jnp.float32),
            attn_out_w=nrm((width, width)), attn_out_b=jnp.zeros((width,), jnp.float32),
            ln2_g=jnp.ones((width,), jnp.float32), ln2_b=jnp.zeros((width,), jnp.float32),
            fc1_w=nrm((width, 4 * width)), fc1_b=jnp.zeros((4 * width,), jnp.float32),
            fc2_w=nrm((4 * width, width)), fc2_b=jnp.zeros((width,), jnp.float32),
        )

    n_patches = (IMG_SIZE // PATCH) ** 2
    visual = dict(
        patch_w=nrm((IN_CH * PATCH * PATCH, VISION_WIDTH)),
        class_emb=nrm((VISION_WIDTH,)),
        pos_emb=nrm((n_patches + 1, VISION_WIDTH)),
        ln_pre_g=jnp.ones((VISION_WIDTH,), jnp.float32),
        ln_pre_b=jnp.zeros((VISION_WIDTH,), jnp.float32),
        blocks=[block_params(VISION_WIDTH) for _ in range(N_LAYERS)],
        ln_post_g=jnp.ones((VISION_WIDTH,), jnp.float32),
        ln_post_b=jnp.zeros((VISION_WIDTH,), jnp.float32),
        proj=nrm((VISION_WIDTH, EMBED_DIM)),
    )
    text = dict(
        token_emb=nrm((VOCAB, TEXT_WIDTH)),
        pos_emb=nrm((CONTEXT_LEN, TEXT_WIDTH)),
        blocks=[block_params(TEXT_WIDTH) for _ in range(N_LAYERS)],
        ln_final_g=jnp.ones((TEXT_WIDTH,), jnp.float32),
        ln_final_b=jnp.zeros((TEXT_WIDTH,), jnp.float32),
        text_proj=nrm((TEXT_WIDTH, EMBED_DIM)),
    )
    return dict(
        visual=visual,
        text=text,
        # StreetCLIP's own trainable head (only its dtype matters in forward()).
        vision_projection_w=nrm((EMBED_DIM, EMBED_DIM)),
        vision_projection_b=jnp.zeros((EMBED_DIM,), jnp.float32),
    )


# ---------------------------------- main ---------------------------------------
if __name__ == "__main__":
    key = jax.random.PRNGKey(0)
    k_img, k_tok, k_par = jax.random.split(key, 3)

    B = 2
    images = jax.random.normal(k_img, (B, IN_CH, IMG_SIZE, IMG_SIZE), jnp.float32)
    # synthetic "tokenized texts": EOT (highest id) in the last slot
    tokens = jax.random.randint(k_tok, (B, CONTEXT_LEN), 1, VOCAB - 1, dtype=jnp.int32)
    tokens = tokens.at[:, -1].set(VOCAB - 1)

    params = init_params(k_par)

    # TODO(synk): pretrained ViT-L/14 CLIP checkpoint loading and the BPE text
    # tokenizer (clip.tokenize) have no Pallas equivalent; weights are synthetic
    # and tokens are passed in pre-tokenized.
    img_feats, txt_feats = streetclip_forward(images, tokens, params)
    img_feats = jax.block_until_ready(img_feats)
    txt_feats = jax.block_until_ready(txt_feats)

    assert img_feats.shape == (B, EMBED_DIM) and txt_feats.shape == (B, EMBED_DIM)
    assert bool(jnp.all(jnp.isfinite(img_feats))) and bool(jnp.all(jnp.isfinite(txt_feats)))

    # correctness vs. pure-JAX reference (approx-reciprocal softmax => loose tol)
    ref_img = _ref_encode_image(images, params["visual"])
    ref_txt = _ref_encode_text(tokens, params["text"])
    img_err = float(jnp.max(jnp.abs(img_feats - ref_img)))
    txt_err = float(jnp.max(jnp.abs(txt_feats - ref_txt)))
    assert img_err < 5e-2 and txt_err < 5e-2, (img_err, txt_err)

    print("KERNEL_OK")
</pallas_src>

<mosaic_0001>
module attributes {stable_mosaic.version = 11 : i64} {
  func.func @_vision_embed_kernel(%arg0: i32, %arg1: memref<1x5x192xf32, #tpu.memory_space<vmem>>, %arg2: memref<192x32xf32, #tpu.memory_space<vmem>>, %arg3: memref<1x32xf32, #tpu.memory_space<vmem>>, %arg4: memref<5x32xf32, #tpu.memory_space<vmem>>, %arg5: memref<1x32xf32, #tpu.memory_space<vmem>>, %arg6: memref<1x32xf32, #tpu.memory_space<vmem>>, %arg7: memref<1x5x32xf32, #tpu.memory_space<vmem>>) attributes {dimension_semantics = [#tpu.dimension_semantics<parallel>], iteration_bounds = array<i64: 2>, scalar_prefetch = 0 : i64, scratch_operands = 0 : i64, tpu.core_type = #tpu.core_type<tc>, window_params = [{transform_indices = @transform_0, window_bounds = array<i64: 1, 5, 192>}, {pipeline_mode = #tpu.pipeline_mode<synchronous>, transform_indices = @transform_1, window_bounds = array<i64: 192, 32>}, {pipeline_mode = #tpu.pipeline_mode<synchronous>, transform_indices = @transform_2, window_bounds = array<i64: 1, 32>}, {pipeline_mode = #tpu.pipeline_mode<synchronous>, transform_indices = @transform_3, window_bounds = array<i64: 5, 32>}, {pipeline_mode = #tpu.pipeline_mode<synchronous>, transform_indices = @transform_4, window_bounds = array<i64: 1, 32>}, {pipeline_mode = #tpu.pipeline_mode<synchronous>, transform_indices = @transform_5, window_bounds = array<i64: 1, 32>}, {transform_indices = @transform_6, window_bounds = array<i64: 1, 5, 32>}]} {
    %c0 = arith.constant 0 : index
    %c0_0 = arith.constant 0 : index
    %c0_1 = arith.constant 0 : index
    %0 = vector.load %arg1[%c0, %c0_0, %c0_1] : memref<1x5x192xf32, #tpu.memory_space<vmem>>, vector<1x5x192xf32>
    %1 = vector.shape_cast %0 : vector<1x5x192xf32> to vector<5x192xf32>
    %c0_2 = arith.constant 0 : index
    %c0_3 = arith.constant 0 : index
    %2 = vector.load %arg2[%c0_2, %c0_3] : memref<192x32xf32, #tpu.memory_space<vmem>>, vector<192x32xf32>
    %cst = arith.constant dense<0.000000e+00> : vector<5x32xf32>
    %3 = tpu.matmul %1, %2, %cst {dimension_numbers = #tpu.dot_dimension_numbers<[1], [0], [0], [1], [0, 0, 1, 1], [], []>} : vector<5x192xf32>, vector<192x32xf32>, vector<5x32xf32> -> vector<5x32xf32>
    %4 = tpu.iota {dimensions = array<i32: 0>} : vector<5x1xi32>
    %c0_i32 = arith.constant 0 : i32
    %5 = vector.broadcast %c0_i32 : i32 to vector<5x1xi32>
    %6 = arith.cmpi eq, %4, %5 : vector<5x1xi32>
    %7 = arith.extui %6 : vector<5x1xi1> to vector<5x1xi32>
    %8 = arith.sitofp %7 : vector<5x1xi32> to vector<5x1xf32>
    %c0_4 = arith.constant 0 : index
    %c0_5 = arith.constant 0 : index
    %9 = vector.load %arg3[%c0_4, %c0_5] : memref<1x32xf32, #tpu.memory_space<vmem>>, vector<1x32xf32>
    %10 = vector.broadcast %8 : vector<5x1xf32> to vector<5x32xf32>
    %11 = vector.broadcast %9 : vector<1x32xf32> to vector<5x32xf32>
    %12 = arith.mulf %10, %11 : vector<5x32xf32>
    %13 = arith.addf %3, %12 : vector<5x32xf32>
    %c0_6 = arith.constant 0 : index
    %c0_7 = arith.constant 0 : index
    %14 = vector.load %arg4[%c0_6, %c0_7] : memref<5x32xf32, #tpu.memory_space<vmem>>, vector<5x32xf32>
    %15 = arith.addf %13, %14 : vector<5x32xf32>
    %c0_8 = arith.constant 0 : index
    %c0_9 = arith.constant 0 : index
    %16 = vector.load %arg5[%c0_8, %c0_9] : memref<1x32xf32, #tpu.memory_space<vmem>>, vector<1x32xf32>
    %c0_10 = arith.constant 0 : index
    %c0_11 = arith.constant 0 : index
    %17 = vector.load %arg6[%c0_10, %c0_11] : memref<1x32xf32, #tpu.memory_space<vmem>>, vector<1x32xf32>
    %cst_12 = arith.constant dense<0.000000e+00> : vector<5xf32>
    %18 = vector.multi_reduction <add>, %15, %cst_12 [1] : vector<5x32xf32> to vector<5xf32>
    %19 = vector.shape_cast %18 : vector<5xf32> to vector<5x1xf32>
    %cst_13 = arith.constant 3.200000e+01 : f32
    %20 = vector.broadcast %cst_13 : f32 to vector<5x1xf32>
    %21 = arith.divf %19, %20 : vector<5x1xf32>
    %22 = vector.broadcast %21 : vector<5x1xf32> to vector<5x32xf32>
    %23 = arith.subf %15, %22 : vector<5x32xf32>
    %24 = arith.mulf %23, %23 : vector<5x32xf32>
    %cst_14 = arith.constant dense<0.000000e+00> : vector<5xf32>
    %25 = vector.multi_reduction <add>, %24, %cst_14 [1] : vector<5x32xf32> to vector<5xf32>
    %26 = vector.shape_cast %25 : vector<5xf32> to vector<5x1xf32>
    %cst_15 = arith.constant 3.200000e+01 : f32
    %27 = vector.broadcast %cst_15 : f32 to vector<5x1xf32>
    %28 = arith.divf %26, %27 : vector<5x1xf32>
    %29 = vector.broadcast %21 : vector<5x1xf32> to vector<5x32xf32>
    %30 = arith.subf %15, %29 : vector<5x32xf32>
    %cst_16 = arith.constant 9.99999974E-6 : f32
    %31 = vector.broadcast %cst_16 : f32 to vector<5x1xf32>
    %32 = arith.addf %28, %31 : vector<5x1xf32>
    %33 = math.rsqrt %32 : vector<5x1xf32>
    %34 = vector.broadcast %33 : vector<5x1xf32> to vector<5x32xf32>
    %35 = arith.mulf %30, %34 : vector<5x32xf32>
    %36 = vector.broadcast %16 : vector<1x32xf32> to vector<5x32xf32>
    %37 = arith.mulf %35, %36 : vector<5x32xf32>
    %38 = vector.broadcast %17 : vector<1x32xf32> to vector<5x32xf32>
    %39 = arith.addf %37, %38 : vector<5x32xf32>
    %c0_17 = arith.constant 0 : index
    %c0_18 = arith.constant 0 : index
    %c0_19 = arith.constant 0 : index
    %40 = vector.load %arg7[%c0_17, %c0_18, %c0_19] : memref<1x5x32xf32, #tpu.memory_space<vmem>>, vector<1x5x32xf32>
    %41 = vector.shape_cast %40 : vector<1x5x32xf32> to vector<5x32xf32>
    %42 = vector.shape_cast %39 : vector<5x32xf32> to vector<1x5x32xf32>
    tpu.vector_store %arg7[%c0_17, %c0_18, %c0_19], %42 {strides = array<i32>} : memref<1x5x32xf32, #tpu.memory_space<vmem>>, vector<1x5x32xf32>,
    return
  }
  func.func @transform_0(%arg0: i32) -> (i32, i32, i32) {
    %c0_i32 = arith.constant 0 : i32
    %c0_i32_0 = arith.constant 0 : i32
    %c0_i32_1 = arith.constant 0 : i32
    return %arg0, %c0_i32, %c0_i32_0 : i32, i32, i32
  }
  func.func @transform_1(%arg0: i32) -> (i32, i32) {
    %c0_i32 = arith.constant 0 : i32
    %c0_i32_0 = arith.constant 0 : i32
    %c0_i32_1 = arith.constant 0 : i32
    return %c0_i32, %c0_i32_0 : i32, i32
  }
  func.func @transform_2(%arg0: i32) -> (i32, i32) {
    %c0_i32 = arith.constant 0 : i32
    %c0_i32_0 = arith.constant 0 : i32
    %c0_i32_1 = arith.constant 0 : i32
    return %c0_i32, %c0_i32_0 : i32, i32
  }
  func.func @transform_3(%arg0: i32) -> (i32, i32) {
    %c0_i32 = arith.constant 0 : i32
    %c0_i32_0 = arith.constant 0 : i32
    %c0_i32_1 = arith.constant 0 : i32
    return %c0_i32, %c0_i32_0 : i32, i32
  }
  func.func @transform_4(%arg0: i32) -> (i32, i32) {
    %c0_i32 = arith.constant 0 : i32
    %c0_i32_0 = arith.constant 0 : i32
    %c0_i32_1 = arith.constant 0 : i32
    return %c0_i32, %c0_i32_0 : i32, i32
  }
  func.func @transform_5(%arg0: i32) -> (i32, i32) {
    %c0_i32 = arith.constant 0 : i32
    %c0_i32_0 = arith.constant 0 : i32
    %c0_i32_1 = arith.constant 0 : i32
    return %c0_i32, %c0_i32_0 : i32, i32
  }
  func.func @transform_6(%arg0: i32) -> (i32, i32, i32) {
    %c0_i32 = arith.constant 0 : i32
    %c0_i32_0 = arith.constant 0 : i32
    %c0_i32_1 = arith.constant 0 : i32
    return %arg0, %c0_i32, %c0_i32_0 : i32, i32, i32
  }
}

module attributes {stable_mosaic.version = 11 : i64} {
  func.func @_transformer_kernel(%arg0: i32, %arg1: i32, %arg2: memref<1x5x32xf32, #tpu.memory_space<vmem>>, %arg3: memref<1x1x32xf32, #tpu.memory_space<vmem>>, %arg4: memref<1x1x32xf32, #tpu.memory_space<vmem>>, %arg5: memref<1x32x96xf32, #tpu.memory_space<vmem>>, %arg6: memref<1x1x96xf32, #tpu.memory_space<vmem>>, %arg7: memref<1x32x32xf32, #tpu.memory_space<vmem>>, %arg8: memref<1x1x32xf32, #tpu.memory_space<vmem>>, %arg9: memref<1x1x32xf32, #tpu.memory_space<vmem>>, %arg10: memref<1x1x32xf32, #tpu.memory_space<vmem>>, %arg11: memref<1x32x128xf32, #tpu.memory_space<vmem>>, %arg12: memref<1x1x128xf32, #tpu.memory_space<vmem>>, %arg13: memref<1x128x32xf32, #tpu.memory_space<vmem>>, %arg14: memref<1x1x32xf32, #tpu.memory_space<vmem>>, %arg15: memref<1x5x32xf32, #tpu.memory_space<vmem>>) attributes {dimension_semantics = [#tpu.dimension_semantics<parallel>, #tpu.dimension_semantics<arbitrary>], iteration_bounds = array<i64: 2, 2>, scalar_prefetch = 0 : i64, scratch_operands = 0 : i64, tpu.core_type = #tpu.core_type<tc>, window_params = [{transform_indices = @transform_0, window_bounds = array<i64: 1, 5, 32>}, {transform_indices = @transform_1, window_bounds = array<i64: 1, 1, 32>}, {transform_indices = @transform_2, window_bounds = array<i64: 1, 1, 32>}, {transform_indices = @transform_3, window_bounds = array<i64: 1, 32, 96>}, {transform_indices = @transform_4, window_bounds = array<i64: 1, 1, 96>}, {transform_indices = @transform_5, window_bounds = array<i64: 1, 32, 32>}, {transform_indices = @transform_6, window_bounds = array<i64: 1, 1, 32>}, {transform_indices = @transform_7, window_bounds = array<i64: 1, 1, 32>}, {transform_indices = @transform_8, window_bounds = array<i64: 1, 1, 32>}, {transform_indices = @transform_9, window_bounds = array<i64: 1, 32, 128>}, {transform_indices = @transform_10, window_bounds = array<i64: 1, 1, 128>}, {transform_indices = @transform_11, window_bounds = array<i64: 1, 128, 32>}, {transform_indices = @transform_12, window_bounds = array<i64: 1, 1, 32>}, {transform_indices = @transform_13, window_bounds = array<i64: 1, 5, 32>}]} {
    %c0_i32 = arith.constant 0 : i32
    %0 = arith.cmpi eq, %arg1, %c0_i32 : i32
    %1 = arith.extui %0 : i1 to i32
    %c0_i32_0 = arith.constant 0 : i32
    %2 = arith.cmpi ne, %1, %c0_i32_0 : i32
    scf.if %2 {
      %c0_78 = arith.constant 0 : index
      %c0_79 = arith.constant 0 : index
      %c0_80 = arith.constant 0 : index
      %175 = vector.load %arg2[%c0_78, %c0_79, %c0_80] : memref<1x5x32xf32, #tpu.memory_space<vmem>>, vector<1x5x32xf32>
      %176 = vector.shape_cast %175 : vector<1x5x32xf32> to vector<5x32xf32>
      %c0_81 = arith.constant 0 : index
      %c0_82 = arith.constant 0 : index
      %c0_83 = arith.constant 0 : index
      %177 = vector.load %arg15[%c0_81, %c0_82, %c0_83] : memref<1x5x32xf32, #tpu.memory_space<vmem>>, vector<1x5x32xf32>
      %178 = vector.shape_cast %177 : vector<1x5x32xf32> to vector<5x32xf32>
      %179 = vector.shape_cast %176 : vector<5x32xf32> to vector<1x5x32xf32>
      tpu.vector_store %arg15[%c0_81, %c0_82, %c0_83], %179 {strides = array<i32>} : memref<1x5x32xf32, #tpu.memory_space<vmem>>, vector<1x5x32xf32>,
    } else {
    }
    %c0 = arith.constant 0 : index
    %c0_1 = arith.constant 0 : index
    %c0_2 = arith.constant 0 : index
    %3 = vector.load %arg15[%c0, %c0_1, %c0_2] : memref<1x5x32xf32, #tpu.memory_space<vmem>>, vector<1x5x32xf32>
    %4 = vector.shape_cast %3 : vector<1x5x32xf32> to vector<5x32xf32>
    %c0_3 = arith.constant 0 : index
    %c0_4 = arith.constant 0 : index
    %c0_5 = arith.constant 0 : index
    %5 = vector.load %arg3[%c0_3, %c0_4, %c0_5] : memref<1x1x32xf32, #tpu.memory_space<vmem>>, vector<1x1x32xf32>
    %6 = vector.shape_cast %5 : vector<1x1x32xf32> to vector<1x32xf32>
    %c0_6 = arith.constant 0 : index
    %c0_7 = arith.constant 0 : index
    %c0_8 = arith.constant 0 : index
    %7 = vector.load %arg4[%c0_6, %c0_7, %c0_8] : memref<1x1x32xf32, #tpu.memory_space<vmem>>, vector<1x1x32xf32>
    %8 = vector.shape_cast %7 : vector<1x1x32xf32> to vector<1x32xf32>
    %cst = arith.constant dense<0.000000e+00> : vector<5xf32>
    %9 = vector.multi_reduction <add>, %4, %cst [1] : vector<5x32xf32> to vector<5xf32>
    %10 = vector.shape_cast %9 : vector<5xf32> to vector<5x1xf32>
    %cst_9 = arith.constant 3.200000e+01 : f32
    %11 = vector.broadcast %cst_9 : f32 to vector<5x1xf32>
    %12 = arith.divf %10, %11 : vector<5x1xf32>
    %13 = vector.broadcast %12 : vector<5x1xf32> to vector<5x32xf32>
    %14 = arith.subf %4, %13 : vector<5x32xf32>
    %15 = arith.mulf %14, %14 : vector<5x32xf32>
    %cst_10 = arith.constant dense<0.000000e+00> : vector<5xf32>
    %16 = vector.multi_reduction <add>, %15, %cst_10 [1] : vector<5x32xf32> to vector<5xf32>
    %17 = vector.shape_cast %16 : vector<5xf32> to vector<5x1xf32>
    %cst_11 = arith.constant 3.200000e+01 : f32
    %18 = vector.broadcast %cst_11 : f32 to vector<5x1xf32>
    %19 = arith.divf %17, %18 : vector<5x1xf32>
    %20 = vector.broadcast %12 : vector<5x1xf32> to vector<5x32xf32>
    %21 = arith.subf %4, %20 : vector<5x32xf32>
    %cst_12 = arith.constant 9.99999974E-6 : f32
    %22 = vector.broadcast %cst_12 : f32 to vector<5x1xf32>
    %23 = arith.addf %19, %22 : vector<5x1xf32>
    %24 = math.rsqrt %23 : vector<5x1xf32>
    %25 = vector.broadcast %24 : vector<5x1xf32> to vector<5x32xf32>
    %26 = arith.mulf %21, %25 : vector<5x32xf32>
    %27 = vector.broadcast %6 : vector<1x32xf32> to vector<5x32xf32>
    %28 = arith.mulf %26, %27 : vector<5x32xf32>
    %29 = vector.broadcast %8 : vector<1x32xf32> to vector<5x32xf32>
    %30 = arith.addf %28, %29 : vector<5x32xf32>
    %c0_13 = arith.constant 0 : index
    %c0_14 = arith.constant 0 : index
    %c0_15 = arith.constant 0 : index
    %31 = vector.load %arg5[%c0_13, %c0_14, %c0_15] : memref<1x32x96xf32, #tpu.memory_space<vmem>>, vector<1x32x96xf32>
    %32 = vector.shape_cast %31 : vector<1x32x96xf32> to vector<32x96xf32>
    %cst_16 = arith.constant dense<0.000000e+00> : vector<5x96xf32>
    %33 = tpu.matmul %30, %32, %cst_16 {dimension_numbers = #tpu.dot_dimension_numbers<[1], [0], [0], [1], [0, 0, 1, 1], [], []>} : vector<5x32xf32>, vector<32x96xf32>, vector<5x96xf32> -> vector<5x96xf32>
    %c0_17 = arith.constant 0 : index
    %c0_18 = arith.constant 0 : index
    %c0_19 = arith.constant 0 : index
    %34 = vector.load %arg6[%c0_17, %c0_18, %c0_19] : memref<1x1x96xf32, #tpu.memory_space<vmem>>, vector<1x1x96xf32>
    %35 = vector.shape_cast %34 : vector<1x1x96xf32> to vector<1x96xf32>
    %36 = vector.broadcast %35 : vector<1x96xf32> to vector<5x96xf32>
    %37 = arith.addf %33, %36 : vector<5x96xf32>
    %38 = vector.extract_strided_slice %37 {offsets = [0, 0], sizes = [5, 32], strides = [1, 1]} : vector<5x96xf32> to vector<5x32xf32>
    %cst_20 = arith.constant 0.353553385 : f32
    %39 = vector.broadcast %cst_20 : f32 to vector<5x32xf32>
    %40 = arith.mulf %38, %39 : vector<5x32xf32>
    %41 = vector.extract_strided_slice %37 {offsets = [0, 32], sizes = [5, 32], strides = [1, 1]} : vector<5x96xf32> to vector<5x32xf32>
    %42 = vector.extract_strided_slice %37 {offsets = [0, 64], sizes = [5, 32], strides = [1, 1]} : vector<5x96xf32> to vector<5x32xf32>
    %c0_21 = arith.constant 0 : index
    %c0_22 = arith.constant 0 : index
    %c0_23 = arith.constant 0 : index
    %43 = vector.load %arg7[%c0_21, %c0_22, %c0_23] : memref<1x32x32xf32, #tpu.memory_space<vmem>>, vector<1x32x32xf32>
    %44 = vector.shape_cast %43 : vector<1x32x32xf32> to vector<32x32xf32>
    %cst_24 = arith.constant 0.000000e+00 : f32
    %45 = vector.broadcast %cst_24 : f32 to vector<5x32xf32>
    %46 = vector.extract_strided_slice %40 {offsets = [0, 0], sizes = [5, 8], strides = [1, 1]} : vector<5x32xf32> to vector<5x8xf32>
    %47 = vector.extract_strided_slice %41 {offsets = [0, 0], sizes = [5, 8], strides = [1, 1]} : vector<5x32xf32> to vector<5x8xf32>
    %cst_25 = arith.constant dense<0.000000e+00> : vector<5x5xf32>
    %48 = tpu.matmul %46, %47, %cst_25 {dimension_numbers = #tpu.dot_dimension_numbers<[1], [1], [0], [0], [0, 0, 1, 0], [], []>} : vector<5x8xf32>, vector<5x8xf32>, vector<5x5xf32> -> vector<5x5xf32>
    %cst_26 = arith.constant dense<0xFF800000> : vector<5xf32>
    %49 = vector.multi_reduction <maximumf>, %48, %cst_26 [1] : vector<5x5xf32> to vector<5xf32>
    %50 = vector.shape_cast %49 : vector<5xf32> to vector<5x1xf32>
    %51 = vector.broadcast %50 : vector<5x1xf32> to vector<5x5xf32>
    %52 = arith.subf %48, %51 : vector<5x5xf32>
    %53 = math.exp %52 : vector<5x5xf32>
    %cst_27 = arith.constant dense<0.000000e+00> : vector<5xf32>
    %54 = vector.multi_reduction <add>, %53, %cst_27 [1] : vector<5x5xf32> to vector<5xf32>
    %55 = vector.shape_cast %54 : vector<5xf32> to vector<5x1xf32>
    %56 = tpu.reciprocal %55 {approx = true} : vector<5x1xf32> -> vector<5x1xf32>
    %57 = vector.broadcast %56 : vector<5x1xf32> to vector<5x5xf32>
    %58 = arith.mulf %53, %57 : vector<5x5xf32>
    %59 = vector.extract_strided_slice %42 {offsets = [0, 0], sizes = [5, 8], strides = [1, 1]} : vector<5x32xf32> to vector<5x8xf32>
    %cst_28 = arith.constant dense<0.000000e+00> : vector<5x8xf32>
    %60 = tpu.matmul %58, %59, %cst_28 {dimension_numbers = #tpu.dot_dimension_numbers<[1], [0], [0], [1], [0, 0, 1, 1], [], []>} : vector<5x5xf32>, vector<5x8xf32>, vector<5x8xf32> -> vector<5x8xf32>
    %61 = vector.extract_strided_slice %44 {offsets = [0, 0], sizes = [8, 32], strides = [1, 1]} : vector<32x32xf32> to vector<8x32xf32>
    %cst_29 = arith.constant dense<0.000000e+00> : vector<5x32xf32>
    %62 = tpu.matmul %60, %61, %cst_29 {dimension_numbers = #tpu.dot_dimension_numbers<[1], [0], [0], [1], [0, 0, 1, 1], [], []>} : vector<5x8xf32>, vector<8x32xf32>, vector<5x32xf32> -> vector<5x32xf32>
    %63 = arith.addf %45, %62 : vector<5x32xf32>
    %64 = vector.extract_strided_slice %40 {offsets = [0, 8], sizes = [5, 8], strides = [1, 1]} : vector<5x32xf32> to vector<5x8xf32>
    %65 = vector.extract_strided_slice %41 {offsets = [0, 8], sizes = [5, 8], strides = [1, 1]} : vector<5x32xf32> to vector<5x8xf32>
    %cst_30 = arith.constant dense<0.000000e+00> : vector<5x5xf32>
    %66 = tpu.matmul %64, %65, %cst_30 {dimension_numbers = #tpu.dot_dimension_numbers<[1], [1], [0], [0], [0, 0, 1, 0], [], []>} : vector<5x8xf32>, vector<5x8xf32>, vector<5x5xf32> -> vector<5x5xf32>
    %cst_31 = arith.constant dense<0xFF800000> : vector<5xf32>
    %67 = vector.multi_reduction <maximumf>, %66, %cst_31 [1] : vector<5x5xf32> to vector<5xf32>
    %68 = vector.shape_cast %67 : vector<5xf32> to vector<5x1xf32>
    %69 = vector.broadcast %68 : vector<5x1xf32> to vector<5x5xf32>
    %70 = arith.subf %66, %69 : vector<5x5xf32>
    %71 = math.exp %70 : vector<5x5xf32>
    %cst_32 = arith.constant dense<0.000000e+00> : vector<5xf32>
    %72 = vector.multi_reduction <add>, %71, %cst_32 [1] : vector<5x5xf32> to vector<5xf32>
    %73 = vector.shape_cast %72 : vector<5xf32> to vector<5x1xf32>
    %74 = tpu.reciprocal %73 {approx = true} : vector<5x1xf32> -> vector<5x1xf32>
    %75 = vector.broadcast %74 : vector<5x1xf32> to vector<5x5xf32>
    %76 = arith.mulf %71, %75 : vector<5x5xf32>
    %77 = vector.extract_strided_slice %42 {offsets = [0, 8], sizes = [5, 8], strides = [1, 1]} : vector<5x32xf32> to vector<5x8xf32>
    %cst_33 = arith.constant dense<0.000000e+00> : vector<5x8xf32>
    %78 = tpu.matmul %76, %77, %cst_33 {dimension_numbers = #tpu.dot_dimension_numbers<[1], [0], [0], [1], [0, 0, 1, 1], [], []>} : vector<5x5xf32>, vector<5x8xf32>, vector<5x8xf32> -> vector<5x8xf32>
    %79 = vector.extract_strided_slice %44 {offsets = [8, 0], sizes = [8, 32], strides = [1, 1]} : vector<32x32xf32> to vector<8x32xf32>
    %cst_34 = arith.constant dense<0.000000e+00> : vector<5x32xf32>
    %80 = tpu.matmul %78, %79, %cst_34 {dimension_numbers = #tpu.dot_dimension_numbers<[1], [0], [0], [1], [0, 0, 1, 1], [], []>} : vector<5x8xf32>, vector<8x32xf32>, vector<5x32xf32> -> vector<5x32xf32>
    %81 = arith.addf %63, %80 : vector<5x32xf32>
    %82 = vector.extract_strided_slice %40 {offsets = [0, 16], sizes = [5, 8], strides = [1, 1]} : vector<5x32xf32> to vector<5x8xf32>
    %83 = vector.extract_strided_slice %41 {offsets = [0, 16], sizes = [5, 8], strides = [1, 1]} : vector<5x32xf32> to vector<5x8xf32>
    %cst_35 = arith.constant dense<0.000000e+00> : vector<5x5xf32>
    %84 = tpu.matmul %82, %83, %cst_35 {dimension_numbers = #tpu.dot_dimension_numbers<[1], [1], [0], [0], [0, 0, 1, 0], [], []>} : vector<5x8xf32>, vector<5x8xf32>, vector<5x5xf32> -> vector<5x5xf32>
    %cst_36 = arith.constant dense<0xFF800000> : vector<5xf32>
    %85 = vector.multi_reduction <maximumf>, %84, %cst_36 [1] : vector<5x5xf32> to vector<5xf32>
    %86 = vector.shape_cast %85 : vector<5xf32> to vector<5x1xf32>
    %87 = vector.broadcast %86 : vector<5x1xf32> to vector<5x5xf32>
    %88 = arith.subf %84, %87 : vector<5x5xf32>
    %89 = math.exp %88 : vector<5x5xf32>
    %cst_37 = arith.constant dense<0.000000e+00> : vector<5xf32>
    %90 = vector.multi_reduction <add>, %89, %cst_37 [1] : vector<5x5xf32> to vector<5xf32>
    %91 = vector.shape_cast %90 : vector<5xf32> to vector<5x1xf32>
    %92 = tpu.reciprocal %91 {approx = true} : vector<5x1xf32> -> vector<5x1xf32>
    %93 = vector.broadcast %92 : vector<5x1xf32> to vector<5x5xf32>
    %94 = arith.mulf %89, %93 : vector<5x5xf32>
    %95 = vector.extract_strided_slice %42 {offsets = [0, 16], sizes = [5, 8], strides = [1, 1]} : vector<5x32xf32> to vector<5x8xf32>
    %cst_38 = arith.constant dense<0.000000e+00> : vector<5x8xf32>
    %96 = tpu.matmul %94, %95, %cst_38 {dimension_numbers = #tpu.dot_dimension_numbers<[1], [0], [0], [1], [0, 0, 1, 1], [], []>} : vector<5x5xf32>, vector<5x8xf32>, vector<5x8xf32> -> vector<5x8xf32>
    %97 = vector.extract_strided_slice %44 {offsets = [16, 0], sizes = [8, 32], strides = [1, 1]} : vector<32x32xf32> to vector<8x32xf32>
    %cst_39 = arith.constant dense<0.000000e+00> : vector<5x32xf32>
    %98 = tpu.matmul %96, %97, %cst_39 {dimension_numbers = #tpu.dot_dimension_numbers<[1], [0], [0], [1], [0, 0, 1, 1], [], []>} : vector<5x8xf32>, vector<8x32xf32>, vector<5x32xf32> -> vector<5x32xf32>
    %99 = arith.addf %81, %98 : vector<5x32xf32>
    %100 = vector.extract_strided_slice %40 {offsets = [0, 24], sizes = [5, 8], strides = [1, 1]} : vector<5x32xf32> to vector<5x8xf32>
    %101 = vector.extract_strided_slice %41 {offsets = [0, 24], sizes = [5, 8], strides = [1, 1]} : vector<5x32xf32> to vector<5x8xf32>
    %cst_40 = arith.constant dense<0.000000e+00> : vector<5x5xf32>
    %102 = tpu.matmul %100, %101, %cst_40 {dimension_numbers = #tpu.dot_dimension_numbers<[1], [1], [0], [0], [0, 0, 1, 0], [], []>} : vector<5x8xf32>, vector<5x8xf32>, vector<5x5xf32> -> vector<5x5xf32>
    %cst_41 = arith.constant dense<0xFF800000> : vector<5xf32>
    %103 = vector.multi_reduction <maximumf>, %102, %cst_41 [1] : vector<5x5xf32> to vector<5xf32>
    %104 = vector.shape_cast %103 : vector<5xf32> to vector<5x1xf32>
    %105 = vector.broadcast %104 : vector<5x1xf32> to vector<5x5xf32>
    %106 = arith.subf %102, %105 : vector<5x5xf32>
    %107 = math.exp %106 : vector<5x5xf32>
    %cst_42 = arith.constant dense<0.000000e+00> : vector<5xf32>
    %108 = vector.multi_reduction <add>, %107, %cst_42 [1] : vector<5x5xf32> to vector<5xf32>
    %109 = vector.shape_cast %108 : vector<5xf32> to vector<5x1xf32>
    %110 = tpu.reciprocal %109 {approx = true} : vector<5x1xf32> -> vector<5x1xf32>
    %111 = vector.broadcast %110 : vector<5x1xf32> to vector<5x5xf32>
    %112 = arith.mulf %107, %111 : vector<5x5xf32>
    %113 = vector.extract_strided_slice %42 {offsets = [0, 24], sizes = [5, 8], strides = [1, 1]} : vector<5x32xf32> to vector<5x8xf32>
    %cst_43 = arith.constant dense<0.000000e+00> : vector<5x8xf32>
    %114 = tpu.matmul %112, %113, %cst_43 {dimension_numbers = #tpu.dot_dimension_numbers<[1], [0], [0], [1], [0, 0, 1, 1], [], []>} : vector<5x5xf32>, vector<5x8xf32>, vector<5x8xf32> -> vector<5x8xf32>
    %115 = vector.extract_strided_slice %44 {offsets = [24, 0], sizes = [8, 32], strides = [1, 1]} : vector<32x32xf32> to vector<8x32xf32>
    %cst_44 = arith.constant dense<0.000000e+00> : vector<5x32xf32>
    %116 = tpu.matmul %114, %115, %cst_44 {dimension_numbers = #tpu.dot_dimension_numbers<[1], [0], [0], [1], [0, 0, 1, 1], [], []>} : vector<5x8xf32>, vector<8x32xf32>, vector<5x32xf32> -> vector<5x32xf32>
    %117 = arith.addf %99, %116 : vector<5x32xf32>
    %118 = arith.addf %4, %117 : vector<5x32xf32>
    %c0_45 = arith.constant 0 : index
    %c0_46 = arith.constant 0 : index
    %c0_47 = arith.constant 0 : index
    %119 = vector.load %arg8[%c0_45, %c0_46, %c0_47] : memref<1x1x32xf32, #tpu.memory_space<vmem>>, vector<1x1x32xf32>
    %120 = vector.shape_cast %119 : vector<1x1x32xf32> to vector<1x32xf32>
    %121 = vector.broadcast %120 : vector<1x32xf32> to vector<5x32xf32>
    %122 = arith.addf %118, %121 : vector<5x32xf32>
    %c0_48 = arith.constant 0 : index
    %c0_49 = arith.constant 0 : index
    %c0_50 = arith.constant 0 : index
    %123 = vector.load %arg9[%c0_48, %c0_49, %c0_50] : memref<1x1x32xf32, #tpu.memory_space<vmem>>, vector<1x1x32xf32>
    %124 = vector.shape_cast %123 : vector<1x1x32xf32> to vector<1x32xf32>
    %c0_51 = arith.constant 0 : index
    %c0_52 = arith.constant 0 : index
    %c0_53 = arith.constant 0 : index
    %125 = vector.load %arg10[%c0_51, %c0_52, %c0_53] : memref<1x1x32xf32, #tpu.memory_space<vmem>>, vector<1x1x32xf32>
    %126 = vector.shape_cast %125 : vector<1x1x32xf32> to vector<1x32xf32>
    %cst_54 = arith.constant dense<0.000000e+00> : vector<5xf32>
    %127 = vector.multi_reduction <add>, %122, %cst_54 [1] : vector<5x32xf32> to vector<5xf32>
    %128 = vector.shape_cast %127 : vector<5xf32> to vector<5x1xf32>
    %cst_55 = arith.constant 3.200000e+01 : f32
    %129 = vector.broadcast %cst_55 : f32 to vector<5x1xf32>
    %130 = arith.divf %128, %129 : vector<5x1xf32>
    %131 = vector.broadcast %130 : vector<5x1xf32> to vector<5x32xf32>
    %132 = arith.subf %122, %131 : vector<5x32xf32>
    %133 = arith.mulf %132, %132 : vector<5x32xf32>
    %cst_56 = arith.constant dense<0.000000e+00> : vector<5xf32>
    %134 = vector.multi_reduction <add>, %133, %cst_56 [1] : vector<5x32xf32> to vector<5xf32>
    %135 = vector.shape_cast %134 : vector<5xf32> to vector<5x1xf32>
    %cst_57 = arith.constant 3.200000e+01 : f32
    %136 = vector.broadcast %cst_57 : f32 to vector<5x1xf32>
    %137 = arith.divf %135, %136 : vector<5x1xf32>
    %138 = vector.broadcast %130 : vector<5x1xf32> to vector<5x32xf32>
    %139 = arith.subf %122, %138 : vector<5x32xf32>
    %cst_58 = arith.constant 9.99999974E-6 : f32
    %140 = vector.broadcast %cst_58 : f32 to vector<5x1xf32>
    %141 = arith.addf %137, %140 : vector<5x1xf32>
    %142 = math.rsqrt %141 : vector<5x1xf32>
    %143 = vector.broadcast %142 : vector<5x1xf32> to vector<5x32xf32>
    %144 = arith.mulf %139, %143 : vector<5x32xf32>
    %145 = vector.broadcast %124 : vector<1x32xf32> to vector<5x32xf32>
    %146 = arith.mulf %144, %145 : vector<5x32xf32>
    %147 = vector.broadcast %126 : vector<1x32xf32> to vector<5x32xf32>
    %148 = arith.addf %146, %147 : vector<5x32xf32>
    %c0_59 = arith.constant 0 : index
    %c0_60 = arith.constant 0 : index
    %c0_61 = arith.constant 0 : index
    %149 = vector.load %arg11[%c0_59, %c0_60, %c0_61] : memref<1x32x128xf32, #tpu.memory_space<vmem>>, vector<1x32x128xf32>
    %150 = vector.shape_cast %149 : vector<1x32x128xf32> to vector<32x128xf32>
    %cst_62 = arith.constant dense<0.000000e+00> : vector<5x128xf32>
    %151 = tpu.matmul %148, %150, %cst_62 {dimension_numbers = #tpu.dot_dimension_numbers<[1], [0], [0], [1], [0, 0, 1, 1], [], []>} : vector<5x32xf32>, vector<32x128xf32>, vector<5x128xf32> -> vector<5x128xf32>
    %c0_63 = arith.constant 0 : index
    %c0_64 = arith.constant 0 : index
    %c0_65 = arith.constant 0 : index
    %152 = vector.load %arg12[%c0_63, %c0_64, %c0_65] : memref<1x1x128xf32, #tpu.memory_space<vmem>>, vector<1x1x128xf32>
    %153 = vector.shape_cast %152 : vector<1x1x128xf32> to vector<1x128xf32>
    %154 = vector.broadcast %153 : vector<1x128xf32> to vector<5x128xf32>
    %155 = arith.addf %151, %154 : vector<5x128xf32>
    %cst_66 = arith.constant 1.702000e+00 : f32
    %156 = vector.broadcast %cst_66 : f32 to vector<5x128xf32>
    %157 = arith.mulf %156, %155 : vector<5x128xf32>
    %158 = arith.negf %157 : vector<5x128xf32>
    %159 = math.exp %158 : vector<5x128xf32>
    %cst_67 = arith.constant 1.000000e+00 : f32
    %160 = vector.broadcast %cst_67 : f32 to vector<5x128xf32>
    %161 = arith.addf %160, %159 : vector<5x128xf32>
    %162 = arith.divf %160, %161 : vector<5x128xf32>
    %163 = arith.mulf %155, %162 : vector<5x128xf32>
    %c0_68 = arith.constant 0 : index
    %c0_69 = arith.constant 0 : index
    %c0_70 = arith.constant 0 : index
    %164 = vector.load %arg13[%c0_68, %c0_69, %c0_70] : memref<1x128x32xf32, #tpu.memory_space<vmem>>, vector<1x128x32xf32>
    %165 = vector.shape_cast %164 : vector<1x128x32xf32> to vector<128x32xf32>
    %cst_71 = arith.constant dense<0.000000e+00> : vector<5x32xf32>
    %166 = tpu.matmul %163, %165, %cst_71 {dimension_numbers = #tpu.dot_dimension_numbers<[1], [0], [0], [1], [0, 0, 1, 1], [], []>} : vector<5x128xf32>, vector<128x32xf32>, vector<5x32xf32> -> vector<5x32xf32>
    %c0_72 = arith.constant 0 : index
    %c0_73 = arith.constant 0 : index
    %c0_74 = arith.constant 0 : index
    %167 = vector.load %arg14[%c0_72, %c0_73, %c0_74] : memref<1x1x32xf32, #tpu.memory_space<vmem>>, vector<1x1x32xf32>
    %168 = vector.shape_cast %167 : vector<1x1x32xf32> to vector<1x32xf32>
    %169 = vector.broadcast %168 : vector<1x32xf32> to vector<5x32xf32>
    %170 = arith.addf %166, %169 : vector<5x32xf32>
    %171 = arith.addf %122, %170 : vector<5x32xf32>
    %c0_75 = arith.constant 0 : index
    %c0_76 = arith.constant 0 : index
    %c0_77 = arith.constant 0 : index
    %172 = vector.load %arg15[%c0_75, %c0_76, %c0_77] : memref<1x5x32xf32, #tpu.memory_space<vmem>>, vector<1x5x32xf32>
    %173 = vector.shape_cast %172 : vector<1x5x32xf32> to vector<5x32xf32>
    %174 = vector.shape_cast %171 : vector<5x32xf32> to vector<1x5x32xf32>
    tpu.vector_store %arg15[%c0_75, %c0_76, %c0_77], %174 {strides = array<i32>} : memref<1x5x32xf32, #tpu.memory_space<vmem>>, vector<1x5x32xf32>,
    return
  }
  func.func @transform_0(%arg0: i32, %arg1: i32) -> (i32, i32, i32) {
    %c0_i32 = arith.constant 0 : i32
    %c0_i32_0 = arith.constant 0 : i32
    %c0_i32_1 = arith.constant 0 : i32
    return %arg0, %c0_i32, %c0_i32_0 : i32, i32, i32
  }
  func.func @transform_1(%arg0: i32, %arg1: i32) -> (i32, i32, i32) {
    %c0_i32 = arith.constant 0 : i32
    %c0_i32_0 = arith.constant 0 : i32
    %c0_i32_1 = arith.constant 0 : i32
    return %arg1, %c0_i32, %c0_i32_0 : i32, i32, i32
  }
  func.func @transform_2(%arg0: i32, %arg1: i32) -> (i32, i32, i32) {
    %c0_i32 = arith.constant 0 : i32
    %c0_i32_0 = arith.constant 0 : i32
    %c0_i32_1 = arith.constant 0 : i32
    return %arg1, %c0_i32, %c0_i32_0 : i32, i32, i32
  }
  func.func @transform_3(%arg0: i32, %arg1: i32) -> (i32, i32, i32) {
    %c0_i32 = arith.constant 0 : i32
    %c0_i32_0 = arith.constant 0 : i32
    %c0_i32_1 = arith.constant 0 : i32
    return %arg1, %c0_i32, %c0_i32_0 : i32, i32, i32
  }
  func.func @transform_4(%arg0: i32, %arg1: i32) -> (i32, i32, i32) {
    %c0_i32 = arith.constant 0 : i32
    %c0_i32_0 = arith.constant 0 : i32
    %c0_i32_1 = arith.constant 0 : i32
    return %arg1, %c0_i32, %c0_i32_0 : i32, i32, i32
  }
  func.func @transform_5(%arg0: i32, %arg1: i32) -> (i32, i32, i32) {
    %c0_i32 = arith.constant 0 : i32
    %c0_i32_0 = arith.constant 0 : i32
    %c0_i32_1 = arith.constant 0 : i32
    return %arg1, %c0_i32, %c0_i32_0 : i32, i32, i32
  }
  func.func @transform_6(%arg0: i32, %arg1: i32) -> (i32, i32, i32) {
    %c0_i32 = arith.constant 0 : i32
    %c0_i32_0 = arith.constant 0 : i32
    %c0_i32_1 = arith.constant 0 : i32
    return %arg1, %c0_i32, %c0_i32_0 : i32, i32, i32
  }
  func.func @transform_7(%arg0: i32, %arg1: i32) -> (i32, i32, i32) {
    %c0_i32 = arith.constant 0 : i32
    %c0_i32_0 = arith.constant 0 : i32
    %c0_i32_1 = arith.constant 0 : i32
    return %arg1, %c0_i32, %c0_i32_0 : i32, i32, i32
  }
  func.func @transform_8(%arg0: i32, %arg1: i32) -> (i32, i32, i32) {
    %c0_i32 = arith.constant 0 : i32
    %c0_i32_0 = arith.constant 0 : i32
    %c0_i32_1 = arith.constant 0 : i32
    return %arg1, %c0_i32, %c0_i32_0 : i32, i32, i32
  }
  func.func @transform_9(%arg0: i32, %arg1: i32) -> (i32, i32, i32) {
    %c0_i32 = arith.constant 0 : i32
    %c0_i32_0 = arith.constant 0 : i32
    %c0_i32_1 = arith.constant 0 : i32
    return %arg1, %c0_i32, %c0_i32_0 : i32, i32, i32
  }
  func.func @transform_10(%arg0: i32, %arg1: i32) -> (i32, i32, i32) {
    %c0_i32 = arith.constant 0 : i32
    %c0_i32_0 = arith.constant 0 : i32
    %c0_i32_1 = arith.constant 0 : i32
    return %arg1, %c0_i32, %c0_i32_0 : i32, i32, i32
  }
  func.func @transform_11(%arg0: i32, %arg1: i32) -> (i32, i32, i32) {
    %c0_i32 = arith.constant 0 : i32
    %c0_i32_0 = arith.constant 0 : i32
    %c0_i32_1 = arith.constant 0 : i32
    return %arg1, %c0_i32, %c0_i32_0 : i32, i32, i32
  }
  func.func @transform_12(%arg0: i32, %arg1: i32) -> (i32, i32, i32) {
    %c0_i32 = arith.constant 0 : i32
    %c0_i32_0 = arith.constant 0 : i32
    %c0_i32_1 = arith.constant 0 : i32
    return %arg1, %c0_i32, %c0_i32_0 : i32, i32, i32
  }
  func.func @transform_13(%arg0: i32, %arg1: i32) -> (i32, i32, i32) {
    %c0_i32 = arith.constant 0 : i32
    %c0_i32_0 = arith.constant 0 : i32
    %c0_i32_1 = arith.constant 0 : i32
    return %arg0, %c0_i32, %c0_i32_0 : i32, i32, i32
  }
}

module attributes {stable_mosaic.version = 11 : i64} {
  func.func @_ln_proj_kernel(%arg0: i32, %arg1: memref<2x32xf32, #tpu.memory_space<vmem>>, %arg2: memref<1x32xf32, #tpu.memory_space<vmem>>, %arg3: memref<1x32xf32, #tpu.memory_space<vmem>>, %arg4: memref<32x32xf32, #tpu.memory_space<vmem>>, %arg5: memref<2x32xf32, #tpu.memory_space<vmem>>) attributes {dimension_semantics = [#tpu.dimension_semantics<arbitrary>], iteration_bounds = array<i64: 1>, scalar_prefetch = 0 : i64, scratch_operands = 0 : i64, tpu.core_type = #tpu.core_type<tc>, window_params = [{pipeline_mode = #tpu.pipeline_mode<synchronous>, transform_indices = @transform_0, window_bounds = array<i64: 2, 32>}, {pipeline_mode = #tpu.pipeline_mode<synchronous>, transform_indices = @transform_1, window_bounds = array<i64: 1, 32>}, {pipeline_mode = #tpu.pipeline_mode<synchronous>, transform_indices = @transform_2, window_bounds = array<i64: 1, 32>}, {pipeline_mode = #tpu.pipeline_mode<synchronous>, transform_indices = @transform_3, window_bounds = array<i64: 32, 32>}, {pipeline_mode = #tpu.pipeline_mode<synchronous>, transform_indices = @transform_4, window_bounds = array<i64: 2, 32>}]} {
    %c0 = arith.constant 0 : index
    %c0_0 = arith.constant 0 : index
    %0 = vector.load %arg1[%c0, %c0_0] : memref<2x32xf32, #tpu.memory_space<vmem>>, vector<2x32xf32>
    %c0_1 = arith.constant 0 : index
    %c0_2 = arith.constant 0 : index
    %1 = vector.load %arg2[%c0_1, %c0_2] : memref<1x32xf32, #tpu.memory_space<vmem>>, vector<1x32xf32>
    %c0_3 = arith.constant 0 : index
    %c0_4 = arith.constant 0 : index
    %2 = vector.load %arg3[%c0_3, %c0_4] : memref<1x32xf32, #tpu.memory_space<vmem>>, vector<1x32xf32>
    %cst = arith.constant dense<0.000000e+00> : vector<2xf32>
    %3 = vector.multi_reduction <add>, %0, %cst [1] : vector<2x32xf32> to vector<2xf32>
    %4 = vector.shape_cast %3 : vector<2xf32> to vector<2x1xf32>
    %cst_5 = arith.constant 3.200000e+01 : f32
    %5 = vector.broadcast %cst_5 : f32 to vector<2x1xf32>
    %6 = arith.divf %4, %5 : vector<2x1xf32>
    %7 = vector.broadcast %6 : vector<2x1xf32> to vector<2x32xf32>
    %8 = arith.subf %0, %7 : vector<2x32xf32>
    %9 = arith.mulf %8, %8 : vector<2x32xf32>
    %cst_6 = arith.constant dense<0.000000e+00> : vector<2xf32>
    %10 = vector.multi_reduction <add>, %9, %cst_6 [1] : vector<2x32xf32> to vector<2xf32>
    %11 = vector.shape_cast %10 : vector<2xf32> to vector<2x1xf32>
    %cst_7 = arith.constant 3.200000e+01 : f32
    %12 = vector.broadcast %cst_7 : f32 to vector<2x1xf32>
    %13 = arith.divf %11, %12 : vector<2x1xf32>
    %14 = vector.broadcast %6 : vector<2x1xf32> to vector<2x32xf32>
    %15 = arith.subf %0, %14 : vector<2x32xf32>
    %cst_8 = arith.constant 9.99999974E-6 : f32
    %16 = vector.broadcast %cst_8 : f32 to vector<2x1xf32>
    %17 = arith.addf %13, %16 : vector<2x1xf32>
    %18 = math.rsqrt %17 : vector<2x1xf32>
    %19 = vector.broadcast %18 : vector<2x1xf32> to vector<2x32xf32>
    %20 = arith.mulf %15, %19 : vector<2x32xf32>
    %21 = vector.broadcast %1 : vector<1x32xf32> to vector<2x32xf32>
    %22 = arith.mulf %20, %21 : vector<2x32xf32>
    %23 = vector.broadcast %2 : vector<1x32xf32> to vector<2x32xf32>
    %24 = arith.addf %22, %23 : vector<2x32xf32>
    %c0_9 = arith.constant 0 : index
    %c0_10 = arith.constant 0 : index
    %25 = vector.load %arg4[%c0_9, %c0_10] : memref<32x32xf32, #tpu.memory_space<vmem>>, vector<32x32xf32>
    %cst_11 = arith.constant dense<0.000000e+00> : vector<2x32xf32>
    %26 = tpu.matmul %24, %25, %cst_11 {dimension_numbers = #tpu.dot_dimension_numbers<[1], [0], [0], [1], [0, 0, 1, 1], [], []>} : vector<2x32xf32>, vector<32x32xf32>, vector<2x32xf32> -> vector<2x32xf32>
    %c0_12 = arith.constant 0 : index
    %c0_13 = arith.constant 0 : index
    %27 = vector.load %arg5[%c0_12, %c0_13] : memref<2x32xf32, #tpu.memory_space<vmem>>, vector<2x32xf32>
    tpu.vector_store %arg5[%c0_12, %c0_13], %26 {strides = array<i32>} : memref<2x32xf32, #tpu.memory_space<vmem>>, vector<2x32xf32>,
    return
  }
  func.func @transform_0(%arg0: i32) -> (i32, i32) {
    %c0_i32 = arith.constant 0 : i32
    %c0_i32_0 = arith.constant 0 : i32
    %c0_i32_1 = arith.constant 0 : i32
    return %c0_i32, %c0_i32_0 : i32, i32
  }
  func.func @transform_1(%arg0: i32) -> (i32, i32) {
    %c0_i32 = arith.constant 0 : i32
    %c0_i32_0 = arith.constant 0 : i32
    %c0_i32_1 = arith.constant 0 : i32
    return %c0_i32, %c0_i32_0 : i32, i32
  }
  func.func @transform_2(%arg0: i32) -> (i32, i32) {
    %c0_i32 = arith.constant 0 : i32
    %c0_i32_0 = arith.constant 0 : i32
    %c0_i32_1 = arith.constant 0 : i32
    return %c0_i32, %c0_i32_0 : i32, i32
  }
  func.func @transform_3(%arg0: i32) -> (i32, i32) {
    %c0_i32 = arith.constant 0 : i32
    %c0_i32_0 = arith.constant 0 : i32
    %c0_i32_1 = arith.constant 0 : i32
    return %c0_i32, %c0_i32_0 : i32, i32
  }
  func.func @transform_4(%arg0: i32) -> (i32, i32) {
    %c0_i32 = arith.constant 0 : i32
    %c0_i32_0 = arith.constant 0 : i32
    %c0_i32_1 = arith.constant 0 : i32
    return %c0_i32, %c0_i32_0 : i32, i32
  }
}

module attributes {stable_mosaic.version = 11 : i64} {
  func.func @_transformer_kernel(%arg0: i32, %arg1: i32, %arg2: memref<1x8x32xf32, #tpu.memory_space<vmem>>, %arg3: memref<1x1x32xf32, #tpu.memory_space<vmem>>, %arg4: memref<1x1x32xf32, #tpu.memory_space<vmem>>, %arg5: memref<1x32x96xf32, #tpu.memory_space<vmem>>, %arg6: memref<1x1x96xf32, #tpu.memory_space<vmem>>, %arg7: memref<1x32x32xf32, #tpu.memory_space<vmem>>, %arg8: memref<1x1x32xf32, #tpu.memory_space<vmem>>, %arg9: memref<1x1x32xf32, #tpu.memory_space<vmem>>, %arg10: memref<1x1x32xf32, #tpu.memory_space<vmem>>, %arg11: memref<1x32x128xf32, #tpu.memory_space<vmem>>, %arg12: memref<1x1x128xf32, #tpu.memory_space<vmem>>, %arg13: memref<1x128x32xf32, #tpu.memory_space<vmem>>, %arg14: memref<1x1x32xf32, #tpu.memory_space<vmem>>, %arg15: memref<1x8x32xf32, #tpu.memory_space<vmem>>) attributes {dimension_semantics = [#tpu.dimension_semantics<parallel>, #tpu.dimension_semantics<arbitrary>], iteration_bounds = array<i64: 2, 2>, scalar_prefetch = 0 : i64, scratch_operands = 0 : i64, tpu.core_type = #tpu.core_type<tc>, window_params = [{transform_indices = @transform_0, window_bounds = array<i64: 1, 8, 32>}, {transform_indices = @transform_1, window_bounds = array<i64: 1, 1, 32>}, {transform_indices = @transform_2, window_bounds = array<i64: 1, 1, 32>}, {transform_indices = @transform_3, window_bounds = array<i64: 1, 32, 96>}, {transform_indices = @transform_4, window_bounds = array<i64: 1, 1, 96>}, {transform_indices = @transform_5, window_bounds = array<i64: 1, 32, 32>}, {transform_indices = @transform_6, window_bounds = array<i64: 1, 1, 32>}, {transform_indices = @transform_7, window_bounds = array<i64: 1, 1, 32>}, {transform_indices = @transform_8, window_bounds = array<i64: 1, 1, 32>}, {transform_indices = @transform_9, window_bounds = array<i64: 1, 32, 128>}, {transform_indices = @transform_10, window_bounds = array<i64: 1, 1, 128>}, {transform_indices = @transform_11, window_bounds = array<i64: 1, 128, 32>}, {transform_indices = @transform_12, window_bounds = array<i64: 1, 1, 32>}, {transform_indices = @transform_13, window_bounds = array<i64: 1, 8, 32>}]} {
    %c0_i32 = arith.constant 0 : i32
    %0 = arith.cmpi eq, %arg1, %c0_i32 : i32
    %1 = arith.extui %0 : i1 to i32
    %c0_i32_0 = arith.constant 0 : i32
    %2 = arith.cmpi ne, %1, %c0_i32_0 : i32
    scf.if %2 {
      %c0_80 = arith.constant 0 : index
      %c0_81 = arith.constant 0 : index
      %c0_82 = arith.constant 0 : index
      %185 = vector.load %arg2[%c0_80, %c0_81, %c0_82] : memref<1x8x32xf32, #tpu.memory_space<vmem>>, vector<1x8x32xf32>
      %186 = vector.shape_cast %185 : vector<1x8x32xf32> to vector<8x32xf32>
      %c0_83 = arith.constant 0 : index
      %c0_84 = arith.constant 0 : index
      %c0_85 = arith.constant 0 : index
      %187 = vector.load %arg15[%c0_83, %c0_84, %c0_85] : memref<1x8x32xf32, #tpu.memory_space<vmem>>, vector<1x8x32xf32>
      %188 = vector.shape_cast %187 : vector<1x8x32xf32> to vector<8x32xf32>
      %189 = vector.shape_cast %186 : vector<8x32xf32> to vector<1x8x32xf32>
      tpu.vector_store %arg15[%c0_83, %c0_84, %c0_85], %189 {strides = array<i32>} : memref<1x8x32xf32, #tpu.memory_space<vmem>>, vector<1x8x32xf32>,
    } else {
    }
    %c0 = arith.constant 0 : index
    %c0_1 = arith.constant 0 : index
    %c0_2 = arith.constant 0 : index
    %3 = vector.load %arg15[%c0, %c0_1, %c0_2] : memref<1x8x32xf32, #tpu.memory_space<vmem>>, vector<1x8x32xf32>
    %4 = vector.shape_cast %3 : vector<1x8x32xf32> to vector<8x32xf32>
    %c0_3 = arith.constant 0 : index
    %c0_4 = arith.constant 0 : index
    %c0_5 = arith.constant 0 : index
    %5 = vector.load %arg3[%c0_3, %c0_4, %c0_5] : memref<1x1x32xf32, #tpu.memory_space<vmem>>, vector<1x1x32xf32>
    %6 = vector.shape_cast %5 : vector<1x1x32xf32> to vector<1x32xf32>
    %c0_6 = arith.constant 0 : index
    %c0_7 = arith.constant 0 : index
    %c0_8 = arith.constant 0 : index
    %7 = vector.load %arg4[%c0_6, %c0_7, %c0_8] : memref<1x1x32xf32, #tpu.memory_space<vmem>>, vector<1x1x32xf32>
    %8 = vector.shape_cast %7 : vector<1x1x32xf32> to vector<1x32xf32>
    %cst = arith.constant dense<0.000000e+00> : vector<8xf32>
    %9 = vector.multi_reduction <add>, %4, %cst [1] : vector<8x32xf32> to vector<8xf32>
    %10 = vector.shape_cast %9 : vector<8xf32> to vector<8x1xf32>
    %cst_9 = arith.constant 3.200000e+01 : f32
    %11 = vector.broadcast %cst_9 : f32 to vector<8x1xf32>
    %12 = arith.divf %10, %11 : vector<8x1xf32>
    %13 = vector.broadcast %12 : vector<8x1xf32> to vector<8x32xf32>
    %14 = arith.subf %4, %13 : vector<8x32xf32>
    %15 = arith.mulf %14, %14 : vector<8x32xf32>
    %cst_10 = arith.constant dense<0.000000e+00> : vector<8xf32>
    %16 = vector.multi_reduction <add>, %15, %cst_10 [1] : vector<8x32xf32> to vector<8xf32>
    %17 = vector.shape_cast %16 : vector<8xf32> to vector<8x1xf32>
    %cst_11 = arith.constant 3.200000e+01 : f32
    %18 = vector.broadcast %cst_11 : f32 to vector<8x1xf32>
    %19 = arith.divf %17, %18 : vector<8x1xf32>
    %20 = vector.broadcast %12 : vector<8x1xf32> to vector<8x32xf32>
    %21 = arith.subf %4, %20 : vector<8x32xf32>
    %cst_12 = arith.constant 9.99999974E-6 : f32
    %22 = vector.broadcast %cst_12 : f32 to vector<8x1xf32>
    %23 = arith.addf %19, %22 : vector<8x1xf32>
    %24 = math.rsqrt %23 : vector<8x1xf32>
    %25 = vector.broadcast %24 : vector<8x1xf32> to vector<8x32xf32>
    %26 = arith.mulf %21, %25 : vector<8x32xf32>
    %27 = vector.broadcast %6 : vector<1x32xf32> to vector<8x32xf32>
    %28 = arith.mulf %26, %27 : vector<8x32xf32>
    %29 = vector.broadcast %8 : vector<1x32xf32> to vector<8x32xf32>
    %30 = arith.addf %28, %29 : vector<8x32xf32>
    %c0_13 = arith.constant 0 : index
    %c0_14 = arith.constant 0 : index
    %c0_15 = arith.constant 0 : index
    %31 = vector.load %arg5[%c0_13, %c0_14, %c0_15] : memref<1x32x96xf32, #tpu.memory_space<vmem>>, vector<1x32x96xf32>
    %32 = vector.shape_cast %31 : vector<1x32x96xf32> to vector<32x96xf32>
    %cst_16 = arith.constant dense<0.000000e+00> : vector<8x96xf32>
    %33 = tpu.matmul %30, %32, %cst_16 {dimension_numbers = #tpu.dot_dimension_numbers<[1], [0], [0], [1], [0, 0, 1, 1], [], []>} : vector<8x32xf32>, vector<32x96xf32>, vector<8x96xf32> -> vector<8x96xf32>
    %c0_17 = arith.constant 0 : index
    %c0_18 = arith.constant 0 : index
    %c0_19 = arith.constant 0 : index
    %34 = vector.load %arg6[%c0_17, %c0_18, %c0_19] : memref<1x1x96xf32, #tpu.memory_space<vmem>>, vector<1x1x96xf32>
    %35 = vector.shape_cast %34 : vector<1x1x96xf32> to vector<1x96xf32>
    %36 = vector.broadcast %35 : vector<1x96xf32> to vector<8x96xf32>
    %37 = arith.addf %33, %36 : vector<8x96xf32>
    %38 = vector.extract_strided_slice %37 {offsets = [0, 0], sizes = [8, 32], strides = [1, 1]} : vector<8x96xf32> to vector<8x32xf32>
    %cst_20 = arith.constant 0.353553385 : f32
    %39 = vector.broadcast %cst_20 : f32 to vector<8x32xf32>
    %40 = arith.mulf %38, %39 : vector<8x32xf32>
    %41 = vector.extract_strided_slice %37 {offsets = [0, 32], sizes = [8, 32], strides = [1, 1]} : vector<8x96xf32> to vector<8x32xf32>
    %42 = vector.extract_strided_slice %37 {offsets = [0, 64], sizes = [8, 32], strides = [1, 1]} : vector<8x96xf32> to vector<8x32xf32>
    %43 = tpu.iota {dimensions = array<i32: 0>} : vector<8x8xi32>
    %44 = tpu.iota {dimensions = array<i32: 1>} : vector<8x8xi32>
    %45 = arith.cmpi sgt, %44, %43 : vector<8x8xi32>
    %cst_21 = arith.constant -1.000000e+09 : f32
    %cst_22 = arith.constant 0.000000e+00 : f32
    %46 = vector.broadcast %cst_21 : f32 to vector<8x8xf32>
    %47 = vector.broadcast %cst_22 : f32 to vector<8x8xf32>
    %48 = arith.select %45, %46, %47 : vector<8x8xi1>, vector<8x8xf32>
    %c0_23 = arith.constant 0 : index
    %c0_24 = arith.constant 0 : index
    %c0_25 = arith.constant 0 : index
    %49 = vector.load %arg7[%c0_23, %c0_24, %c0_25] : memref<1x32x32xf32, #tpu.memory_space<vmem>>, vector<1x32x32xf32>
    %50 = vector.shape_cast %49 : vector<1x32x32xf32> to vector<32x32xf32>
    %cst_26 = arith.constant 0.000000e+00 : f32
    %51 = vector.broadcast %cst_26 : f32 to vector<8x32xf32>
    %52 = vector.extract_strided_slice %40 {offsets = [0, 0], sizes = [8, 8], strides = [1, 1]} : vector<8x32xf32> to vector<8x8xf32>
    %53 = vector.extract_strided_slice %41 {offsets = [0, 0], sizes = [8, 8], strides = [1, 1]} : vector<8x32xf32> to vector<8x8xf32>
    %cst_27 = arith.constant dense<0.000000e+00> : vector<8x8xf32>
    %54 = tpu.matmul %52, %53, %cst_27 {dimension_numbers = #tpu.dot_dimension_numbers<[1], [1], [0], [0], [0, 0, 1, 0], [], []>} : vector<8x8xf32>, vector<8x8xf32>, vector<8x8xf32> -> vector<8x8xf32>
    %55 = arith.addf %54, %48 : vector<8x8xf32>
    %cst_28 = arith.constant dense<0xFF800000> : vector<8xf32>
    %56 = vector.multi_reduction <maximumf>, %55, %cst_28 [1] : vector<8x8xf32> to vector<8xf32>
    %57 = vector.shape_cast %56 : vector<8xf32> to vector<8x1xf32>
    %58 = vector.broadcast %57 : vector<8x1xf32> to vector<8x8xf32>
    %59 = arith.subf %55, %58 : vector<8x8xf32>
    %60 = math.exp %59 : vector<8x8xf32>
    %cst_29 = arith.constant dense<0.000000e+00> : vector<8xf32>
    %61 = vector.multi_reduction <add>, %60, %cst_29 [1] : vector<8x8xf32> to vector<8xf32>
    %62 = vector.shape_cast %61 : vector<8xf32> to vector<8x1xf32>
    %63 = tpu.reciprocal %62 {approx = true} : vector<8x1xf32> -> vector<8x1xf32>
    %64 = vector.broadcast %63 : vector<8x1xf32> to vector<8x8xf32>
    %65 = arith.mulf %60, %64 : vector<8x8xf32>
    %66 = vector.extract_strided_slice %42 {offsets = [0, 0], sizes = [8, 8], strides = [1, 1]} : vector<8x32xf32> to vector<8x8xf32>
    %cst_30 = arith.constant dense<0.000000e+00> : vector<8x8xf32>
    %67 = tpu.matmul %65, %66, %cst_30 {dimension_numbers = #tpu.dot_dimension_numbers<[1], [0], [0], [1], [0, 0, 1, 1], [], []>} : vector<8x8xf32>, vector<8x8xf32>, vector<8x8xf32> -> vector<8x8xf32>
    %68 = vector.extract_strided_slice %50 {offsets = [0, 0], sizes = [8, 32], strides = [1, 1]} : vector<32x32xf32> to vector<8x32xf32>
    %cst_31 = arith.constant dense<0.000000e+00> : vector<8x32xf32>
    %69 = tpu.matmul %67, %68, %cst_31 {dimension_numbers = #tpu.dot_dimension_numbers<[1], [0], [0], [1], [0, 0, 1, 1], [], []>} : vector<8x8xf32>, vector<8x32xf32>, vector<8x32xf32> -> vector<8x32xf32>
    %70 = arith.addf %51, %69 : vector<8x32xf32>
    %71 = vector.extract_strided_slice %40 {offsets = [0, 8], sizes = [8, 8], strides = [1, 1]} : vector<8x32xf32> to vector<8x8xf32>
    %72 = vector.extract_strided_slice %41 {offsets = [0, 8], sizes = [8, 8], strides = [1, 1]} : vector<8x32xf32> to vector<8x8xf32>
    %cst_32 = arith.constant dense<0.000000e+00> : vector<8x8xf32>
    %73 = tpu.matmul %71, %72, %cst_32 {dimension_numbers = #tpu.dot_dimension_numbers<[1], [1], [0], [0], [0, 0, 1, 0], [], []>} : vector<8x8xf32>, vector<8x8xf32>, vector<8x8xf32> -> vector<8x8xf32>
    %74 = arith.addf %73, %48 : vector<8x8xf32>
    %cst_33 = arith.constant dense<0xFF800000> : vector<8xf32>
    %75 = vector.multi_reduction <maximumf>, %74, %cst_33 [1] : vector<8x8xf32> to vector<8xf32>
    %76 = vector.shape_cast %75 : vector<8xf32> to vector<8x1xf32>
    %77 = vector.broadcast %76 : vector<8x1xf32> to vector<8x8xf32>
    %78 = arith.subf %74, %77 : vector<8x8xf32>
    %79 = math.exp %78 : vector<8x8xf32>
    %cst_34 = arith.constant dense<0.000000e+00> : vector<8xf32>
    %80 = vector.multi_reduction <add>, %79, %cst_34 [1] : vector<8x8xf32> to vector<8xf32>
    %81 = vector.shape_cast %80 : vector<8xf32> to vector<8x1xf32>
    %82 = tpu.reciprocal %81 {approx = true} : vector<8x1xf32> -> vector<8x1xf32>
    %83 = vector.broadcast %82 : vector<8x1xf32> to vector<8x8xf32>
    %84 = arith.mulf %79, %83 : vector<8x8xf32>
    %85 = vector.extract_strided_slice %42 {offsets = [0, 8], sizes = [8, 8], strides = [1, 1]} : vector<8x32xf32> to vector<8x8xf32>
    %cst_35 = arith.constant dense<0.000000e+00> : vector<8x8xf32>
    %86 = tpu.matmul %84, %85, %cst_35 {dimension_numbers = #tpu.dot_dimension_numbers<[1], [0], [0], [1], [0, 0, 1, 1], [], []>} : vector<8x8xf32>, vector<8x8xf32>, vector<8x8xf32> -> vector<8x8xf32>
    %87 = vector.extract_strided_slice %50 {offsets = [8, 0], sizes = [8, 32], strides = [1, 1]} : vector<32x32xf32> to vector<8x32xf32>
    %cst_36 = arith.constant dense<0.000000e+00> : vector<8x32xf32>
    %88 = tpu.matmul %86, %87, %cst_36 {dimension_numbers = #tpu.dot_dimension_numbers<[1], [0], [0], [1], [0, 0, 1, 1], [], []>} : vector<8x8xf32>, vector<8x32xf32>, vector<8x32xf32> -> vector<8x32xf32>
    %89 = arith.addf %70, %88 : vector<8x32xf32>
    %90 = vector.extract_strided_slice %40 {offsets = [0, 16], sizes = [8, 8], strides = [1, 1]} : vector<8x32xf32> to vector<8x8xf32>
    %91 = vector.extract_strided_slice %41 {offsets = [0, 16], sizes = [8, 8], strides = [1, 1]} : vector<8x32xf32> to vector<8x8xf32>
    %cst_37 = arith.constant dense<0.000000e+00> : vector<8x8xf32>
    %92 = tpu.matmul %90, %91, %cst_37 {dimension_numbers = #tpu.dot_dimension_numbers<[1], [1], [0], [0], [0, 0, 1, 0], [], []>} : vector<8x8xf32>, vector<8x8xf32>, vector<8x8xf32> -> vector<8x8xf32>
    %93 = arith.addf %92, %48 : vector<8x8xf32>
    %cst_38 = arith.constant dense<0xFF800000> : vector<8xf32>
    %94 = vector.multi_reduction <maximumf>, %93, %cst_38 [1] : vector<8x8xf32> to vector<8xf32>
    %95 = vector.shape_cast %94 : vector<8xf32> to vector<8x1xf32>
    %96 = vector.broadcast %95 : vector<8x1xf32> to vector<8x8xf32>
    %97 = arith.subf %93, %96 : vector<8x8xf32>
    %98 = math.exp %97 : vector<8x8xf32>
    %cst_39 = arith.constant dense<0.000000e+00> : vector<8xf32>
    %99 = vector.multi_reduction <add>, %98, %cst_39 [1] : vector<8x8xf32> to vector<8xf32>
    %100 = vector.shape_cast %99 : vector<8xf32> to vector<8x1xf32>
    %101 = tpu.reciprocal %100 {approx = true} : vector<8x1xf32> -> vector<8x1xf32>
    %102 = vector.broadcast %101 : vector<8x1xf32> to vector<8x8xf32>
    %103 = arith.mulf %98, %102 : vector<8x8xf32>
    %104 = vector.extract_strided_slice %42 {offsets = [0, 16], sizes = [8, 8], strides = [1, 1]} : vector<8x32xf32> to vector<8x8xf32>
    %cst_40 = arith.constant dense<0.000000e+00> : vector<8x8xf32>
    %105 = tpu.matmul %103, %104, %cst_40 {dimension_numbers = #tpu.dot_dimension_numbers<[1], [0], [0], [1], [0, 0, 1, 1], [], []>} : vector<8x8xf32>, vector<8x8xf32>, vector<8x8xf32> -> vector<8x8xf32>
    %106 = vector.extract_strided_slice %50 {offsets = [16, 0], sizes = [8, 32], strides = [1, 1]} : vector<32x32xf32> to vector<8x32xf32>
    %cst_41 = arith.constant dense<0.000000e+00> : vector<8x32xf32>
    %107 = tpu.matmul %105, %106, %cst_41 {dimension_numbers = #tpu.dot_dimension_numbers<[1], [0], [0], [1], [0, 0, 1, 1], [], []>} : vector<8x8xf32>, vector<8x32xf32>, vector<8x32xf32> -> vector<8x32xf32>
    %108 = arith.addf %89, %107 : vector<8x32xf32>
    %109 = vector.extract_strided_slice %40 {offsets = [0, 24], sizes = [8, 8], strides = [1, 1]} : vector<8x32xf32> to vector<8x8xf32>
    %110 = vector.extract_strided_slice %41 {offsets = [0, 24], sizes = [8, 8], strides = [1, 1]} : vector<8x32xf32> to vector<8x8xf32>
    %cst_42 = arith.constant dense<0.000000e+00> : vector<8x8xf32>
    %111 = tpu.matmul %109, %110, %cst_42 {dimension_numbers = #tpu.dot_dimension_numbers<[1], [1], [0], [0], [0, 0, 1, 0], [], []>} : vector<8x8xf32>, vector<8x8xf32>, vector<8x8xf32> -> vector<8x8xf32>
    %112 = arith.addf %111, %48 : vector<8x8xf32>
    %cst_43 = arith.constant dense<0xFF800000> : vector<8xf32>
    %113 = vector.multi_reduction <maximumf>, %112, %cst_43 [1] : vector<8x8xf32> to vector<8xf32>
    %114 = vector.shape_cast %113 : vector<8xf32> to vector<8x1xf32>
    %115 = vector.broadcast %114 : vector<8x1xf32> to vector<8x8xf32>
    %116 = arith.subf %112, %115 : vector<8x8xf32>
    %117 = math.exp %116 : vector<8x8xf32>
    %cst_44 = arith.constant dense<0.000000e+00> : vector<8xf32>
    %118 = vector.multi_reduction <add>, %117, %cst_44 [1] : vector<8x8xf32> to vector<8xf32>
    %119 = vector.shape_cast %118 : vector<8xf32> to vector<8x1xf32>
    %120 = tpu.reciprocal %119 {approx = true} : vector<8x1xf32> -> vector<8x1xf32>
    %121 = vector.broadcast %120 : vector<8x1xf32> to vector<8x8xf32>
    %122 = arith.mulf %117, %121 : vector<8x8xf32>
    %123 = vector.extract_strided_slice %42 {offsets = [0, 24], sizes = [8, 8], strides = [1, 1]} : vector<8x32xf32> to vector<8x8xf32>
    %cst_45 = arith.constant dense<0.000000e+00> : vector<8x8xf32>
    %124 = tpu.matmul %122, %123, %cst_45 {dimension_numbers = #tpu.dot_dimension_numbers<[1], [0], [0], [1], [0, 0, 1, 1], [], []>} : vector<8x8xf32>, vector<8x8xf32>, vector<8x8xf32> -> vector<8x8xf32>
    %125 = vector.extract_strided_slice %50 {offsets = [24, 0], sizes = [8, 32], strides = [1, 1]} : vector<32x32xf32> to vector<8x32xf32>
    %cst_46 = arith.constant dense<0.000000e+00> : vector<8x32xf32>
    %126 = tpu.matmul %124, %125, %cst_46 {dimension_numbers = #tpu.dot_dimension_numbers<[1], [0], [0], [1], [0, 0, 1, 1], [], []>} : vector<8x8xf32>, vector<8x32xf32>, vector<8x32xf32> -> vector<8x32xf32>
    %127 = arith.addf %108, %126 : vector<8x32xf32>
    %128 = arith.addf %4, %127 : vector<8x32xf32>
    %c0_47 = arith.constant 0 : index
    %c0_48 = arith.constant 0 : index
    %c0_49 = arith.constant 0 : index
    %129 = vector.load %arg8[%c0_47, %c0_48, %c0_49] : memref<1x1x32xf32, #tpu.memory_space<vmem>>, vector<1x1x32xf32>
    %130 = vector.shape_cast %129 : vector<1x1x32xf32> to vector<1x32xf32>
    %131 = vector.broadcast %130 : vector<1x32xf32> to vector<8x32xf32>
    %132 = arith.addf %128, %131 : vector<8x32xf32>
    %c0_50 = arith.constant 0 : index
    %c0_51 = arith.constant 0 : index
    %c0_52 = arith.constant 0 : index
    %133 = vector.load %arg9[%c0_50, %c0_51, %c0_52] : memref<1x1x32xf32, #tpu.memory_space<vmem>>, vector<1x1x32xf32>
    %134 = vector.shape_cast %133 : vector<1x1x32xf32> to vector<1x32xf32>
    %c0_53 = arith.constant 0 : index
    %c0_54 = arith.constant 0 : index
    %c0_55 = arith.constant 0 : index
    %135 = vector.load %arg10[%c0_53, %c0_54, %c0_55] : memref<1x1x32xf32, #tpu.memory_space<vmem>>, vector<1x1x32xf32>
    %136 = vector.shape_cast %135 : vector<1x1x32xf32> to vector<1x32xf32>
    %cst_56 = arith.constant dense<0.000000e+00> : vector<8xf32>
    %137 = vector.multi_reduction <add>, %132, %cst_56 [1] : vector<8x32xf32> to vector<8xf32>
    %138 = vector.shape_cast %137 : vector<8xf32> to vector<8x1xf32>
    %cst_57 = arith.constant 3.200000e+01 : f32
    %139 = vector.broadcast %cst_57 : f32 to vector<8x1xf32>
    %140 = arith.divf %138, %139 : vector<8x1xf32>
    %141 = vector.broadcast %140 : vector<8x1xf32> to vector<8x32xf32>
    %142 = arith.subf %132, %141 : vector<8x32xf32>
    %143 = arith.mulf %142, %142 : vector<8x32xf32>
    %cst_58 = arith.constant dense<0.000000e+00> : vector<8xf32>
    %144 = vector.multi_reduction <add>, %143, %cst_58 [1] : vector<8x32xf32> to vector<8xf32>
    %145 = vector.shape_cast %144 : vector<8xf32> to vector<8x1xf32>
    %cst_59 = arith.constant 3.200000e+01 : f32
    %146 = vector.broadcast %cst_59 : f32 to vector<8x1xf32>
    %147 = arith.divf %145, %146 : vector<8x1xf32>
    %148 = vector.broadcast %140 : vector<8x1xf32> to vector<8x32xf32>
    %149 = arith.subf %132, %148 : vector<8x32xf32>
    %cst_60 = arith.constant 9.99999974E-6 : f32
    %150 = vector.broadcast %cst_60 : f32 to vector<8x1xf32>
    %151 = arith.addf %147, %150 : vector<8x1xf32>
    %152 = math.rsqrt %151 : vector<8x1xf32>
    %153 = vector.broadcast %152 : vector<8x1xf32> to vector<8x32xf32>
    %154 = arith.mulf %149, %153 : vector<8x32xf32>
    %155 = vector.broadcast %134 : vector<1x32xf32> to vector<8x32xf32>
    %156 = arith.mulf %154, %155 : vector<8x32xf32>
    %157 = vector.broadcast %136 : vector<1x32xf32> to vector<8x32xf32>
    %158 = arith.addf %156, %157 : vector<8x32xf32>
    %c0_61 = arith.constant 0 : index
    %c0_62 = arith.constant 0 : index
    %c0_63 = arith.constant 0 : index
    %159 = vector.load %arg11[%c0_61, %c0_62, %c0_63] : memref<1x32x128xf32, #tpu.memory_space<vmem>>, vector<1x32x128xf32>
    %160 = vector.shape_cast %159 : vector<1x32x128xf32> to vector<32x128xf32>
    %cst_64 = arith.constant dense<0.000000e+00> : vector<8x128xf32>
    %161 = tpu.matmul %158, %160, %cst_64 {dimension_numbers = #tpu.dot_dimension_numbers<[1], [0], [0], [1], [0, 0, 1, 1], [], []>} : vector<8x32xf32>, vector<32x128xf32>, vector<8x128xf32> -> vector<8x128xf32>
    %c0_65 = arith.constant 0 : index
    %c0_66 = arith.constant 0 : index
    %c0_67 = arith.constant 0 : index
    %162 = vector.load %arg12[%c0_65, %c0_66, %c0_67] : memref<1x1x128xf32, #tpu.memory_space<vmem>>, vector<1x1x128xf32>
    %163 = vector.shape_cast %162 : vector<1x1x128xf32> to vector<1x128xf32>
    %164 = vector.broadcast %163 : vector<1x128xf32> to vector<8x128xf32>
    %165 = arith.addf %161, %164 : vector<8x128xf32>
    %cst_68 = arith.constant 1.702000e+00 : f32
    %166 = vector.broadcast %cst_68 : f32 to vector<8x128xf32>
    %167 = arith.mulf %166, %165 : vector<8x128xf32>
    %168 = arith.negf %167 : vector<8x128xf32>
    %169 = math.exp %168 : vector<8x128xf32>
    %cst_69 = arith.constant 1.000000e+00 : f32
    %170 = vector.broadcast %cst_69 : f32 to vector<8x128xf32>
    %171 = arith.addf %170, %169 : vector<8x128xf32>
    %172 = arith.divf %170, %171 : vector<8x128xf32>
    %173 = arith.mulf %165, %172 : vector<8x128xf32>
    %c0_70 = arith.constant 0 : index
    %c0_71 = arith.constant 0 : index
    %c0_72 = arith.constant 0 : index
    %174 = vector.load %arg13[%c0_70, %c0_71, %c0_72] : memref<1x128x32xf32, #tpu.memory_space<vmem>>, vector<1x128x32xf32>
    %175 = vector.shape_cast %174 : vector<1x128x32xf32> to vector<128x32xf32>
    %cst_73 = arith.constant dense<0.000000e+00> : vector<8x32xf32>
    %176 = tpu.matmul %173, %175, %cst_73 {dimension_numbers = #tpu.dot_dimension_numbers<[1], [0], [0], [1], [0, 0, 1, 1], [], []>} : vector<8x128xf32>, vector<128x32xf32>, vector<8x32xf32> -> vector<8x32xf32>
    %c0_74 = arith.constant 0 : index
    %c0_75 = arith.constant 0 : index
    %c0_76 = arith.constant 0 : index
    %177 = vector.load %arg14[%c0_74, %c0_75, %c0_76] : memref<1x1x32xf32, #tpu.memory_space<vmem>>, vector<1x1x32xf32>
    %178 = vector.shape_cast %177 : vector<1x1x32xf32> to vector<1x32xf32>
    %179 = vector.broadcast %178 : vector<1x32xf32> to vector<8x32xf32>
    %180 = arith.addf %176, %179 : vector<8x32xf32>
    %181 = arith.addf %132, %180 : vector<8x32xf32>
    %c0_77 = arith.constant 0 : index
    %c0_78 = arith.constant 0 : index
    %c0_79 = arith.constant 0 : index
    %182 = vector.load %arg15[%c0_77, %c0_78, %c0_79] : memref<1x8x32xf32, #tpu.memory_space<vmem>>, vector<1x8x32xf32>
    %183 = vector.shape_cast %182 : vector<1x8x32xf32> to vector<8x32xf32>
    %184 = vector.shape_cast %181 : vector<8x32xf32> to vector<1x8x32xf32>
    tpu.vector_store %arg15[%c0_77, %c0_78, %c0_79], %184 {strides = array<i32>} : memref<1x8x32xf32, #tpu.memory_space<vmem>>, vector<1x8x32xf32>,
    return
  }
  func.func @transform_0(%arg0: i32, %arg1: i32) -> (i32, i32, i32) {
    %c0_i32 = arith.constant 0 : i32
    %c0_i32_0 = arith.constant 0 : i32
    %c0_i32_1 = arith.constant 0 : i32
    return %arg0, %c0_i32, %c0_i32_0 : i32, i32, i32
  }
  func.func @transform_1(%arg0: i32, %arg1: i32) -> (i32, i32, i32) {
    %c0_i32 = arith.constant 0 : i32
    %c0_i32_0 = arith.constant 0 : i32
    %c0_i32_1 = arith.constant 0 : i32
    return %arg1, %c0_i32, %c0_i32_0 : i32, i32, i32
  }
  func.func @transform_2(%arg0: i32, %arg1: i32) -> (i32, i32, i32) {
    %c0_i32 = arith.constant 0 : i32
    %c0_i32_0 = arith.constant 0 : i32
    %c0_i32_1 = arith.constant 0 : i32
    return %arg1, %c0_i32, %c0_i32_0 : i32, i32, i32
  }
  func.func @transform_3(%arg0: i32, %arg1: i32) -> (i32, i32, i32) {
    %c0_i32 = arith.constant 0 : i32
    %c0_i32_0 = arith.constant 0 : i32
    %c0_i32_1 = arith.constant 0 : i32
    return %arg1, %c0_i32, %c0_i32_0 : i32, i32, i32
  }
  func.func @transform_4(%arg0: i32, %arg1: i32) -> (i32, i32, i32) {
    %c0_i32 = arith.constant 0 : i32
    %c0_i32_0 = arith.constant 0 : i32
    %c0_i32_1 = arith.constant 0 : i32
    return %arg1, %c0_i32, %c0_i32_0 : i32, i32, i32
  }
  func.func @transform_5(%arg0: i32, %arg1: i32) -> (i32, i32, i32) {
    %c0_i32 = arith.constant 0 : i32
    %c0_i32_0 = arith.constant 0 : i32
    %c0_i32_1 = arith.constant 0 : i32
    return %arg1, %c0_i32, %c0_i32_0 : i32, i32, i32
  }
  func.func @transform_6(%arg0: i32, %arg1: i32) -> (i32, i32, i32) {
    %c0_i32 = arith.constant 0 : i32
    %c0_i32_0 = arith.constant 0 : i32
    %c0_i32_1 = arith.constant 0 : i32
    return %arg1, %c0_i32, %c0_i32_0 : i32, i32, i32
  }
  func.func @transform_7(%arg0: i32, %arg1: i32) -> (i32, i32, i32) {
    %c0_i32 = arith.constant 0 : i32
    %c0_i32_0 = arith.constant 0 : i32
    %c0_i32_1 = arith.constant 0 : i32
    return %arg1, %c0_i32, %c0_i32_0 : i32, i32, i32
  }
  func.func @transform_8(%arg0: i32, %arg1: i32) -> (i32, i32, i32) {
    %c0_i32 = arith.constant 0 : i32
    %c0_i32_0 = arith.constant 0 : i32
    %c0_i32_1 = arith.constant 0 : i32
    return %arg1, %c0_i32, %c0_i32_0 : i32, i32, i32
  }
  func.func @transform_9(%arg0: i32, %arg1: i32) -> (i32, i32, i32) {
    %c0_i32 = arith.constant 0 : i32
    %c0_i32_0 = arith.constant 0 : i32
    %c0_i32_1 = arith.constant 0 : i32
    return %arg1, %c0_i32, %c0_i32_0 : i32, i32, i32
  }
  func.func @transform_10(%arg0: i32, %arg1: i32) -> (i32, i32, i32) {
    %c0_i32 = arith.constant 0 : i32
    %c0_i32_0 = arith.constant 0 : i32
    %c0_i32_1 = arith.constant 0 : i32
    return %arg1, %c0_i32, %c0_i32_0 : i32, i32, i32
  }
  func.func @transform_11(%arg0: i32, %arg1: i32) -> (i32, i32, i32) {
    %c0_i32 = arith.constant 0 : i32
    %c0_i32_0 = arith.constant 0 : i32
    %c0_i32_1 = arith.constant 0 : i32
    return %arg1, %c0_i32, %c0_i32_0 : i32, i32, i32
  }
  func.func @transform_12(%arg0: i32, %arg1: i32) -> (i32, i32, i32) {
    %c0_i32 = arith.constant 0 : i32
    %c0_i32_0 = arith.constant 0 : i32
    %c0_i32_1 = arith.constant 0 : i32
    return %arg1, %c0_i32, %c0_i32_0 : i32, i32, i32
  }
  func.func @transform_13(%arg0: i32, %arg1: i32) -> (i32, i32, i32) {
    %c0_i32 = arith.constant 0 : i32
    %c0_i32_0 = arith.constant 0 : i32
    %c0_i32_1 = arith.constant 0 : i32
    return %arg0, %c0_i32, %c0_i32_0 : i32, i32, i32
  }
}

</mosaic_0001>

<bundles_post_ra>
// kernel: _streetclip_forward.5
= control target key start
LH: loop header
LB: loop body
LE: loop exit
PB: predicated region body
PF: predicated region fallthrough
CT: control target
= control target key end

     0   :  { %s521_s21 = smov 0   ;;  %s658_s0 = inlined_call_operand.vmem [shape: f32[2,5,192], index: 0, kind: input, shape index: {}]   ;;  %s659_s1 = inlined_call_operand.vmem [shape: f32[192,32], index: 1, kind: input, shape index: {}]   ;;  %s660_s2 = inlined_call_operand.vmem [shape: f32[1,32], index: 2, kind: input, shape index: {}]   ;;  %s661_s3 = inlined_call_operand.vmem [shape: f32[5,32], index: 3, kind: input, shape index: {}]   ;;  %s662_s4 = inlined_call_operand.vmem [shape: f32[1,32], index: 4, kind: input, shape index: {}]   ;;  %s663_s5 = inlined_call_operand.vmem [shape: f32[1,32], index: 5, kind: input, shape index: {}]   ;;  %s664_s6 = inlined_call_operand.vmem [shape: f32[2,5,32], index: 6, kind: output, shape index: {}]  }
   0x1 LB: > { %s450_s22 = sadd.s32 4294967295, %s483_s21   ;;  %p454_p0 = scmp.ge.s32.totalorder %s483_s21, 1  ;;  %s483_s21 = sphi %s521_s21, %s16_s21  }
   0x2   : > { %p212_p1 = scmp.lt.s32.totalorder %s483_s21, 3 }
   0x4   : > { %p213_p2 = pnand %p454_p0, %p212_p1 }
   0x5   : > { %p241_p3 = scmp.lt.s32.totalorder (!%p213_p2), %s450_s22, 1 }
   0x6   : > { %216 = sbr.rel (%p213_p2) target bundleno = 566 (0x236), region = 44 }
   0xb   : > { %v267_v0 = vld [vmem:[%s659_s1 + $0x78] sm:$0xff]  ;;  %v485_v1 = vmov 0.0   ;;  %v266_v2 = vld [vmem:[%s659_s1 + $0x70] sm:$0xff]  ;;  %s666_s22 = smov (!%p241_p3, %s450_s22), 1  ;;  %v265_v3 = vld [vmem:[%s659_s1 + $0x68] sm:$0xff]  ;;  %vm289_vm0 = vcmask 523264   ;;  %v276_v27 = vlaneseq }
   0xc   : > { %293 = vmatprep.subr.mxu0 %v485_v1  ;;  %s465_s29 = sshll.u32 %s666_s22, 4  ;;  %v264_v4 = vld [vmem:[%s659_s1 + $0x60] sm:$0xff]  ;;  %v263_v5 = vld [vmem:[%s659_s1 + $0x58] sm:$0xff]  ;;  %v262_v7 = vld [vmem:[%s659_s1 + $0x50] sm:$0xff]  ;;  %vm367_vm2 = vcmask 258048   ;;  %s457_s14 = sshll.u32 %s666_s22, 3 }
   0xd   : > { %294 = vmatpush1.msra.mxu0 %v267_v0  ;;  %s550_s10 = scalar_lea.vmem %s658_s0, %s465_s29  ;;  %v261_v8 = vld [vmem:[%s659_s1 + $0x48] sm:$0xff]  ;;  %v260_v9 = vld [vmem:[%s659_s1 + $0x40] sm:$0xff]  ;;  %v259_v10 = vld [vmem:[%s659_s1 + $0x38] sm:$0xff]  ;;  %v277_v28 = vshrl.u32 %v276_v27, 7  ;;  %s249_s19 = scalar_lea.vmem %s664_s6, %s457_s14 }
   0xe   : > { %295 = vmatprep.subr.mxu0 %v485_v1  ;;  %v251_v6 = vld [vmem:[%s550_s10 + $0x8] sm:$0x1f]  ;;  %v258_v11 = vld [vmem:[%s659_s1 + $0x30] sm:$0xff]  ;;  %v256_v13 = vld [vmem:[%s659_s1 + $0x20] sm:$0xff] }
   0xf   : > { %296 = vmatpush1.msra.mxu0 %v266_v2  ;;  %460 = vmatprep.mubr.msk.f32.mxu0 %vm289_vm0, %v251_v6  ;;  %v257_v12 = vld [vmem:[%s659_s1 + $0x28] sm:$0xff]  ;;  %v255_v14 = vld [vmem:[%s659_s1 + $0x18] sm:$0xff]  ;;  %v254_v15 = vld [vmem:[%s659_s1 + $0x10] sm:$0xff]  ;;  %vm278_vm1 = vcmp.eq.s32.totalorder %v277_v28, 0 }
  0x10   : > { %297 = vmatprep.subr.mxu0 %v485_v1  ;;  %v253_v16 = vld [vmem:[%s659_s1 + $0x8] sm:$0xff]  ;;  %v252_v17 = vld [vmem:[%s659_s1] sm:$0xff]  ;;  %v275_v18 = vld [vmem:[%s659_s1 + $0xb8] sm:$0xff]  ;;  %v458_v29 = vsel %vm278_vm1, 1.0, %v485_v1 }
  0x11   : > { %298 = vmatpush1.msra.mxu0 %v265_v3  ;;  %v274_v19 = vld [vmem:[%s659_s1 + $0xb0] sm:$0xff]  ;;  %v273_v20 = vld [vmem:[%s659_s1 + $0xa8] sm:$0xff]  ;;  %v272_v21 = vld [vmem:[%s659_s1 + $0xa0] sm:$0xff] }
  0x12   : > { %299 = vmatprep.subr.mxu0 %v485_v1  ;;  %v271_v22 = vld [vmem:[%s659_s1 + $0x98] sm:$0xff]  ;;  %v270_v23 = vld [vmem:[%s659_s1 + $0x90] sm:$0xff]  ;;  %v269_v24 = vld [vmem:[%s659_s1 + $0x88] sm:$0xff] }
  0x13   : > { %300 = vmatpush1.msra.mxu0 %v264_v4  ;;  %v268_v25 = vld [vmem:[%s659_s1 + $0x80] sm:$0xff] }
  0x14   : > { %301 = vmatprep.subr.mxu0 %v485_v1  ;;  %v250_v26 = vld [vmem:[%s550_s10] sm:$0x1f] }
  0x15   : > { %302 = vmatpush1.msra.mxu0 %v263_v5  ;;  %v459_v30 = vld [vmem:[%s660_s2] ss:$0 sm:$0xff] }
  0x16   : > { %303 = vmatprep.subr.mxu0 %v485_v1  ;;  %v288_v31 = vmul.f32 %v459_v30, %v458_v29  ;;  %v363_v33 = vld [vmem:[%s661_s3] sm:$0x1f] }
  0x17   : > { %304 = vmatpush1.msra.mxu0 %v262_v7  ;;  %v461_v47 = vld [vmem:[%s662_s4] ss:$0 sm:$0xff] }
  0x18   : > { %305 = vmatprep.subr.mxu0 %v485_v1  ;;  %v462_v49 = vld [vmem:[%s663_s5] ss:$0 sm:$0xff] }
  0x19   : > { %306 = vmatpush1.msra.mxu0 %v261_v8 }
  0x1a   : > { %307 = vmatprep.subr.mxu0 %v485_v1 }
  0x1b   : > { %308 = vmatpush1.msra.mxu0 %v260_v9 }
  0x1c   : > { %309 = vmatprep.subr.mxu0 %v485_v1 }
  0x1d   : > { %310 = vmatpush1.msra.mxu0 %v259_v10 }
  0x1e   : > { %311 = vmatprep.subr.mxu0 %v485_v1 }
  0x1f   : > { %312 = vmatpush1.msra.mxu0 %v258_v11 }
  0x20   : > { %313 = vmatprep.subr.mxu0 %v485_v1 }
  0x21   : > { %314 = vmatpush1.msra.mxu0 %v257_v12 }
  0x22   : > { %315 = vmatprep.subr.mxu0 %v485_v1 }
  0x23   : > { %316 = vmatpush1.msra.mxu0 %v256_v13 }
  0x24   : > { %317 = vmatprep.subr.mxu0 %v485_v1 }
  0x25   : > { %318 = vmatpush1.msra.mxu0 %v255_v14 }
  0x26   : > { %319 = vmatprep.subr.mxu0 %v485_v1 }
  0x27   : > { %320 = vmatpush1.msra.mxu0 %v254_v15 }
  0x28   : > { %321 = vmatprep.subr.mxu0 %v485_v1 }
  0x29   : > { %322 = vmatpush1.msra.mxu0 %v253_v16 }
  0x2a   : > { %323 = vmatprep.subr.mxu0 %v485_v1 }
  0x2b   : > { %324 = vmatpush1.msra.mxu0 %v252_v17 }
  0x2c   : > { %341 = vmatprep.subr.mxu0 %v485_v1 }
  0x2d   : > { %342 = vmatpush2.msra.mxu0 %v275_v18 }
  0x2e   : > { %343 = vmatprep.subr.mxu0 %v485_v1 }
  0x2f   : > { %344 = vmatpush2.msra.mxu0 %v274_v19 }
  0x30   : > { %345 = vmatprep.subr.mxu0 %v485_v1 }
  0x31   : > { %346 = vmatpush2.msra.mxu0 %v273_v20 }
  0x32   : > { %347 = vmatprep.subr.mxu0 %v485_v1 }
  0x33   : > { %348 = vmatpush2.msra.mxu0 %v272_v21 }
  0x34   : > { %349 = vmatprep.subr.mxu0 %v485_v1 }
  0x35   : > { %350 = vmatpush2.msra.mxu0 %v271_v22 }
  0x36   : > { %351 = vmatprep.subr.mxu0 %v485_v1 }
  0x37   : > { %352 = vmatpush2.msra.mxu0 %v270_v23 }
  0x38   : > { %353 = vmatprep.subr.mxu0 %v485_v1 }
  0x39   : > { %354 = vmatpush2.msra.mxu0 %v269_v24 }
  0x3a   : > { %355 = vmatprep.subr.mxu0 %v485_v1 }
  0x3b   : > { %356 = vmatpush2.msra.mxu0 %v268_v25 }
  0x3c   : > { %358 = vmatmul.mubr.f32.vlgmr.msra.gmra.mxu0 %v250_v26 }
  0xfc   : > { %v359_v32 = vpop.f32.mrf.mxu0 }
  0xfd   : > { %v360_v34 = vadd.f32 %v359_v32, %v288_v31 }
  0xfe   : > { %v361_v35 = vpop.f32.mrf.mxu0 }
  0xff   : > { %v364_v36 = vadd.f32 %v363_v33, %v360_v34 }
 0x101   : > { %v368_v37 = vsel %vm367_vm2, %v364_v36, 0.0 }
 0x102   : > { %369 = vadd.xlane.f32.xlu0 %v368_v37 }
 0x18b   : > { %v370_v38 = vpop.xlane.xlu0 %369 }
 0x18c   : > { %v372_v39 = vmul.f32 0.03125, %v370_v38 }
 0x18e   : > { %v373_v40 = vsub.f32 %v364_v36, %v372_v39 }
 0x190   : > { %v374_v41 = vmul.f32 %v373_v40, %v373_v40 }
 0x192   : > { %v375_v42 = vsel %vm367_vm2, %v374_v41, 0.0 }
 0x193   : > { %376 = vadd.xlane.f32.xlu0 %v375_v42 }
 0x21c   : > { %v377_v43 = vpop.xlane.xlu0 %376 }
 0x21d   : > { %v378_v44 = vmul.f32 0.03125, %v377_v43 }
 0x21f   : > { %v379_v45 = vadd.f32 1e-05, %v378_v44 }
 0x221   : > { %475 = vrsqrt.f32 %v379_v45 }
 0x22e   : > { %v476_v46 = vpop.eup %475 }
 0x22f   : > { %v381_v48 = vmul.f32 %v476_v46, %v373_v40 }
 0x231   : > { %v388_v50 = vmul.f32 %v461_v47, %v381_v48 }
 0x233   : > { %v395_v51 = vadd.f32 %v462_v49, %v388_v50 }
 0x235   : > { %396 = vst.msk [vmem:[%s249_s19] sm:$0x1f] %vm367_vm2, %v395_v51 }
 0x236 PF: > { %s16_s21 = sadd.s32 1, %s483_s21  }
 0x237   : > { %p13_p4 = scmp.ge.s32.totalorder %s16_s21, 4  }
 0x239   :  { %15 = sbr.rel (!%p13_p4) target bundleno = 1 (0x1), region = 74 }

// kernel: _streetclip_forward.7
= control target key start
LH: loop header
LB: loop body
LE: loop exit
PB: predicated region body
PF: predicated region fallthrough
CT: control target
= control target key end

     0   :  { %vm21_vm0 = vcmask 254976   ;;  %s244_s0 = inlined_call_operand.vmem [shape: f32[2,32], index: 0, kind: input, shape index: {}]   ;;  %s245_s1 = inlined_call_operand.vmem [shape: f32[1,32], index: 1, kind: input, shape index: {}]   ;;  %s246_s2 = inlined_call_operand.vmem [shape: f32[1,32], index: 2, kind: input, shape index: {}]   ;;  %s247_s3 = inlined_call_operand.vmem [shape: f32[32,32], index: 3, kind: input, shape index: {}]   ;;  %s248_s4 = inlined_call_operand.hbm [shape: f32[2,32], index: 4, kind: output, shape index: {}]  }
   0x1   :  { %v18_v0 = vld [vmem:[%s244_s0] sm:$0x3] }
   0x2   :  { %9 = vsyncpa [#allocation3], 0  ;;  %v22_v1 = vsel %vm21_vm0, %v18_v0, 0.0  ;;  %v53_v7 = vld [vmem:[%s247_s3 + $0x18] sm:$0xff]  ;;  %v189_v8 = vmov 0.0   ;;  %v52_v9 = vld [vmem:[%s247_s3 + $0x10] sm:$0xff] }
   0x3   :  { %23 = vadd.xlane.f32.xlu0 %v22_v1  ;;  %151 = vmatprep.subr.mxu0 %v189_v8  ;;  %vm190_vm1 = vmmov 0   ;;  %v51_v10 = vld [vmem:[%s247_s3 + $0x8] sm:$0xff]  ;;  %v50_v11 = vld [vmem:[%s247_s3] sm:$0xff]  ;;  %vm54_vm2 = vcmask 261120   ;;  %s191_s3 = smov [#allocation2]  }
   0x4   :  { %159 = vmatprep.mubr.msk.f32.mxu0 %vm190_vm1, %v189_v8  ;;  %152 = vmatpush3.msra.mxu0 %v53_v7  ;;  %v143_v16 = vld [vmem:[%s245_s1] ss:$0 sm:$0xff]  ;;  %s135_s28 = sshll.u32 %s191_s3, 4  ;;  %s136_s28 = int_to_ptr.vmem [resolvable:$true] %s135_s28 }
   0x5   :  { %153 = vmatprep.subr.mxu0 %v189_v8  ;;  %v144_v18 = vld [vmem:[%s246_s2] ss:$0 sm:$0xff]  ;;  %s167_s29 = scalar_lea.vmem %s136_s28, 32  ;;  %p172_p1 = scmp.lt.s32.totalorder %s136_s28, %s136_s28 }
   0x6   :  { %154 = vmatpush3.msra.mxu0 %v52_v9  ;;  %p168_p0 = scmp.ne.s32.totalorder %s136_s28, %s167_s29  ;;  %p173_p2 = scmp.lt.s32.totalorder %s167_s29, %s167_s29 }
   0x7   :  { %155 = vmatprep.subr.mxu0 %v189_v8 }
   0x8   :  { %156 = vmatpush3.msra.mxu0 %v51_v10  ;;  %p174_p3 = por %p173_p2, %p172_p1 }
   0x9   :  { %157 = vmatprep.subr.mxu0 %v189_v8 }
   0xa   :  { %158 = vmatpush3.msra.mxu0 %v50_v11  ;;  %p175_p4 = pnand %p174_p3, %p168_p0 }
  0x8c   :  { %v24_v2 = vpop.xlane.xlu0 %23 }
  0x8d   :  { %v26_v3 = vmul.f32 0.03125, %v24_v2 }
  0x8f   :  { %v27_v4 = vsub.f32 %v18_v0, %v26_v3 }
  0x91   :  { %v28_v5 = vmul.f32 %v27_v4, %v27_v4 }
  0x93   :  { %v29_v6 = vsel %vm21_vm0, %v28_v5, 0.0 }
  0x94   :  { %30 = vadd.xlane.f32.xlu0 %v29_v6 }
 0x11d   :  { %v31_v12 = vpop.xlane.xlu0 %30 }
 0x11e   :  { %v32_v13 = vmul.f32 0.03125, %v31_v12 }
 0x120   :  { %v33_v14 = vadd.f32 1e-05, %v32_v13 }
 0x122   :  { %165 = vrsqrt.f32 %v33_v14 }
 0x12f   :  { %v166_v15 = vpop.eup %165 }
 0x130   :  { %v35_v17 = vmul.f32 %v166_v15, %v27_v4 }
 0x132   :  { %v42_v19 = vmul.f32 %v143_v16, %v35_v17 }
 0x134   :  { %v49_v20 = vadd.f32 %v144_v18, %v42_v19 }
 0x136   :  { %160 = vmatmul.mubr.msk.f32.vlgmr.msra.gmra.mxu0 %vm54_vm2, %v49_v20 }
 0x1f6   :  { %v124_v21 = vpop.f32.mrf.mxu0 }
 0x1f7   :  { %128 = vst.msk [vmem:[#allocation2] sm:$0x3] %vm21_vm0, %v124_v21 }
 0x1f8   :  { %v161_v22 = vpop.f32.mrf.mxu0 }
 0x1f9   :  { %178 = shalt.err (!%p175_p4)
}
 0x1fa   :  { %138 = dma.vmem_to_hbm [thread:$0]  %s136_s28, 32, %s248_s4, [#allocation3]  }
 0x1fb   :  { %187 = dma.done.wait [#allocation3], 32  }
 0x1fc   :  { %188 = vsyncadd [#allocation3], 4294967264 }
 0x1fd   :  { %142 = vsyncpa [#allocation3], 1 }

// kernel: _streetclip_forward.6
= control target key start
LH: loop header
LB: loop body
LE: loop exit
PB: predicated region body
PF: predicated region fallthrough
CT: control target
= control target key end

     0   :  { %s2561_s25 = smov 0   ;;  %s2563_s26 = smov 0   ;;  %s2877_s0 = inlined_call_operand.vmem [shape: f32[2,5,32], index: 0, kind: input, shape index: {}]   ;;  %s2878_s1 = inlined_call_operand.vmem [shape: f32[2,1,32], index: 1, kind: input, shape index: {}]   ;;  %s2879_s2 = inlined_call_operand.vmem [shape: f32[2,1,32], index: 2, kind: input, shape index: {}]   ;;  %s2880_s3 = inlined_call_operand.vmem [shape: f32[2,32,96], index: 3, kind: input, shape index: {}]   ;;  %s2881_s4 = inlined_call_operand.vmem [shape: f32[2,1,96], index: 4, kind: input, shape index: {}]   ;;  %s2882_s5 = inlined_call_operand.vmem [shape: f32[2,32,32], index: 5, kind: input, shape index: {}]   ;;  %s2883_s6 = inlined_call_operand.vmem [shape: f32[2,1,32], index: 6, kind: input, shape index: {}]   ;;  %s2884_s7 = inlined_call_operand.vmem [shape: f32[2,1,32], index: 7, kind: input, shape index: {}]   ;;  %s2885_s8 = inlined_call_operand.vmem [shape: f32[2,1,32], index: 8, kind: input, shape index: {}]   ;;  %s2886_s9 = inlined_call_operand.vmem [shape: f32[2,32,128], index: 9, kind: input, shape index: {}]   ;;  %s2887_s10 = inlined_call_operand.vmem [shape: f32[2,1,128], index: 10, kind: input, shape index: {}]   ;;  %s2888_s11 = inlined_call_operand.vmem [shape: f32[2,128,32], index: 11, kind: input, shape index: {}]   ;;  %s2889_s12 = inlined_call_operand.vmem [shape: f32[2,1,32], index: 12, kind: input, shape index: {}]   ;;  %s2890_s13 = inlined_call_operand.vmem [shape: f32[2,5,32], index: 13, kind: output, shape index: {}]  }
   0x1   :  { %2895 = sst [smem:[#allocation8_spill]] %s2877_s0  ;;  %s2565_s27 = smov 0  }
   0x2   :  { %2896 = sst [smem:[#allocation9_spill]] %s2879_s2  ;;  %s2567_s28 = smov 0  }
   0x3   :  { %2897 = sst [smem:[#allocation10_spill]] %s2880_s3  ;;  %s2569_s29 = smov 0  }
   0x4   :  { %2898 = sst [smem:[#allocation11_spill]] %s2882_s5 }
   0x5   :  { %2899 = sst [smem:[#allocation12_spill]] %s2890_s13 }
   0x6 LB: > { %2900 = sst [smem:[#allocation2_spill]] %s2460_s25  ;;  %s32_s30 = sadd.s32 1, %s2468_s27  ;;  %s2476_s29 = sphi %s2569_s29, %s23_s29   ;;  %s2472_s28 = sphi %s2567_s28, %s2923_s28   ;;  %s2468_s27 = sphi %s2565_s27, %s2922_s27   ;;  %s2464_s26 = sphi %s2563_s26, %s2921_s26   ;;  %s2460_s25 = sphi %s2561_s25, %s2920_s25  }
   0x7   : > { %2901 = sst [smem:[#allocation3_spill]] %s2468_s27  ;;  %s35_s14 = sadd.s32 1, %s2472_s28 }
   0x8   : > { %2902 = sst [smem:[#allocation4_spill]] %s2472_s28  ;;  %p33_p0 = scmp.ge.s32.totalorder %s32_s30, 2 }
   0x9   : > { %2903 = sst [smem:[#allocation5_spill]] %s2476_s29  ;;  %p2144_p1 = scmp.ge.s32.totalorder %s2476_s29, 1 }
   0xa   : > { %p502_p2 = scmp.lt.s32.totalorder %s2476_s29, 5  ;;  %s2925_s30 = smov (%p33_p0, %s32_s30), 0 }
   0xb   : > { %2904 = sst [smem:[#allocation6_spill]] %s2925_s30  ;;  %s2927_s14 = smov (!%p33_p0, %s35_s14), %s2472_s28 }
   0xc   : > { %p503_p3 = pnand %p2144_p1, %p502_p2  ;;  %p37_p4 = scmp.ge.s32.totalorder %s2927_s14, 2 }
   0xd   : > { %p588_p5 = scmp.lt.s32.totalorder (!%p503_p3), %s2464_s26, 1  ;;  %p592_p6 = scmp.lt.s32.totalorder (!%p503_p3), %s2460_s25, 1 }
   0xe   : > { %s2929_s14 = smov (%p37_p4, %s2927_s14), 0  ;;  %506 = sbr.rel (%p503_p3) target bundleno = 4024 (0xfb8), region = 72 }
   0xf   : > { %2905 = sst [smem:[#allocation7_spill]] %s2929_s14 }
  0x10   : > { %s2906_s0 = sld [smem:[#allocation8_spill]] (!%p503_p3) }
  0x11   : > { %s2908_s3 = sld [smem:[#allocation10_spill]] (!%p503_p3) }
  0x12   : > { %s2909_s5 = sld [smem:[#allocation11_spill]] (!%p503_p3) }
  0x13   : > { %s2931_s26 = smov (!%p588_p5, %s2464_s26), 1 }
  0x14   : > { %s2595_s15 = scalar_select %p592_p6, %s2460_s25, 1 }
  0x15   : > { %s2145_s16 = sshll.u32 %s2931_s26, 3 }
  0x16   : > { %s591_s19 = scalar_lea.vmem %s2906_s0, %s2145_s16  ;;  %s2189_s30 = sshll.u32 %s2595_s15, 5 }
  0x17   : > { %s2612_s29 = scalar_lea.vmem %s2908_s3, %s2189_s30  ;;  %s2638_s26 = scalar_lea.vmem %s2886_s9, %s2189_s30 }
  0x18   : > { %s2621_s0 = scalar_lea.vmem %s2909_s5, %s2189_s30  ;;  %s627_s13 = scalar_lea.vmem %s2887_s10, %s2595_s15 }
  0x19   : > { %s2192_s5 = sshll.u32 %s2595_s15, 7  ;;  %s635_s23 = scalar_lea.vmem %s2889_s12, %s2595_s15 }
  0x1a   : > { %s2652_s22 = scalar_lea.vmem %s2888_s11, %s2192_s5  ;;  %s2910_s3 = sld [smem:[#allocation12_spill]] }
  0x1b   : > { %s2911_s30 = sld [smem:[#allocation2_spill]] }
  0x20   : > { %s2657_s2 = scalar_lea.vmem %s2910_s3, %s2145_s16 }
  0x21   : > { %p2155_p7 = scmp.ne.s32.totalorder %s2911_s30, 0 }
  0x23   : > { %643 = sbr.rel (%p2155_p7) target bundleno = 42 (0x2a), region = 76 }
  0x28   : > { %v644_v0 = vld [vmem:[%s591_s19] sm:$0x1f]  ;;  %vm645_vm0 = vcmask 258048  }
  0x29   : > { %646 = vst.msk [vmem:[%s2657_s2] sm:$0x1f] %vm645_vm0, %v644_v0 }
  0x2a PF: > { %vm650_vm1 = vcmask 258048   ;;  %v682_v8 = vld [vmem:[%s2612_s29 + $0x18] sm:$0xff]  ;;  %v2478_v9 = vmov 0.0   ;;  %v681_v10 = vld [vmem:[%s2612_s29 + $0x10] sm:$0xff]  ;;  %vm2479_vm2 = vmmov 0   ;;  %v680_v11 = vld [vmem:[%s2612_s29 + $0x8] sm:$0xff]  ;;  %s2912_s16 = scalar_lea.vmem %s2878_s1, %s2595_s15  ;;  %s2915_s21 = scalar_lea.vmem %s2881_s4, %s2595_s15 }
  0x2b   : > { %2244 = vmatprep.subr.mxu0 %v2478_v9  ;;  %2252 = vmatprep.mubr.msk.f32.mxu0 %vm2479_vm2, %v2478_v9  ;;  %v679_v12 = vld [vmem:[%s2612_s29] sm:$0xff]  ;;  %s2913_s25 = sld [smem:[#allocation9_spill]]  ;;  %vm690_vm3 = vcmask 261120   ;;  %s2480_s14 = smov 64   ;;  %vm772_vm4 = vcmask 64512   ;;  %vm866_vm5 = vcmask 1044480  }
  0x2c   : > { %2245 = vmatpush3.msra.mxu0 %v682_v8  ;;  %2280 = vmatprep.subr.mxu1 %v2478_v9  ;;  %v2156_v17 = vld [vmem:[%s2912_s16] ss:$0 sm:$0xff]  ;;  %s2481_s24 = smov 96   ;;  %vm848_vm6 = vcmask 36864   ;;  %s2482_s27 = smov 88   ;;  %vm862_vm7 = vcmask 39936  }
  0x2d   : > { %2246 = vmatprep.subr.mxu0 %v2478_v9  ;;  %2282 = vmatprep.mubr.msk.f32.mxu1 %vm2479_vm2, %v2478_v9  ;;  %v2158_v22 = vld [vmem:[%s2915_s21] ss:$0 sm:$0xff]  ;;  %s2483_s28 = smov 120   ;;  %s2484_s30 = smov 56   ;;  %v766_v60 = vld [vmem:[%s2621_s0 + $0x8] sm:$0xff] }
  0x2e   : > { %2247 = vmatpush3.msra.mxu0 %v681_v10  ;;  %v765_v42 = vld [vmem:[%s2621_s0] sm:$0xff]  ;;  %s2485_s3 = smov 80   ;;  %s2486_s5 = smov 112  }
  0x2f   : > { %2248 = vmatprep.subr.mxu0 %v2478_v9  ;;  %2281 = vmatpush3.msra.mxu1 %v765_v42  ;;  %s2487_s16 = smov 48   ;;  %s2488_s19 = smov 72  }
  0x30   : > { %v2662_v1 = vld [vmem:[%s2657_s2] sm:$0x1f]  ;;  %2249 = vmatpush3.msra.mxu0 %v680_v11  ;;  %2290 = vmatprep.subr.mxu1 %v2478_v9  ;;  %s2489_s29 = smov 104   ;;  %s2916_s18 = scalar_lea.vmem %s2883_s6, %s2595_s15 }
  0x31   : > { %v651_v2 = vsel %vm650_vm1, %v2662_v1, 0.0  ;;  %2250 = vmatprep.subr.mxu0 %v2478_v9  ;;  %s2914_s17 = scalar_lea.vmem %s2913_s25, %s2595_s15  ;;  %s2490_s25 = smov 40   ;;  %v2180_v42 = vld [vmem:[%s2916_s18] ss:$0 sm:$0xff] }
  0x32   : > { %652 = vadd.xlane.f32.xlu0 %v651_v2  ;;  %2251 = vmatpush3.msra.mxu0 %v679_v12  ;;  %v2157_v19 = vld [vmem:[%s2914_s17] ss:$0 sm:$0xff] }
  0x33   : > { %2255 = vmatprep.subr.mxu0 %v2478_v9 }
  0xbb   : > { %v653_v3 = vpop.xlane.xlu0 %652 }
  0xbc   : > { %v655_v4 = vmul.f32 0.03125, %v653_v3 }
  0xbe   : > { %v656_v5 = vsub.f32 %v2662_v1, %v655_v4 }
  0xc0   : > { %v657_v6 = vmul.f32 %v656_v5, %v656_v5 }
  0xc2   : > { %v658_v7 = vsel %vm650_vm1, %v657_v6, 0.0 }
  0xc3   : > { %659 = vadd.xlane.f32.xlu0 %v658_v7 }
 0x14c   : > { %v660_v13 = vpop.xlane.xlu0 %659 }
 0x14d   : > { %v661_v14 = vmul.f32 0.03125, %v660_v13 }
 0x14f   : > { %v662_v15 = vadd.f32 1e-05, %v661_v14 }
 0x151   : > { %2414 = vrsqrt.f32 %v662_v15 }
 0x15e   : > { %v2415_v16 = vpop.eup %2414 }
 0x15f   : > { %v664_v18 = vmul.f32 %v2415_v16, %v656_v5 }
 0x161   : > { %v671_v20 = vmul.f32 %v2156_v17, %v664_v18  ;;  %v767_v18 = vld [vmem:[%s2621_s0 + $0x10] sm:$0xff] }
 0x163   : > { %v678_v21 = vadd.f32 %v2157_v19, %v671_v20 }
 0x165   : > { %2253 = vmatmul.mubr.msk.f32.vlgmr.msra.gmra.mxu0 %vm690_vm3, %v678_v21 }
 0x166   : > { %2257 = vmatprep.mubr.msk.f32.mxu0 %vm2479_vm2, %v2478_v9 }
 0x225   : > { %v760_v23 = vpop.f32.mrf.mxu0 }
 0x226   : > { %v2700_v24 = vadd.f32 %v2158_v22, %v760_v23 }
 0x227   : > { %v2254_v25 = vpop.f32.mrf.mxu0 }
 0x228   : > { %860 = vrot.lane.b32.xlu0 %v2700_v24, %s2480_s14  ;;  %770 = vrot.lane.b32.xlu1 %v2700_v24, %s2481_s24  ;;  %v2706_v27 = vmul.f32 0.35355338, %v2700_v24  ;;  %s2917_s14 = scalar_lea.vmem %s2884_s7, %s2595_s15 }
 0x29a   : > { %v771_v26 = vpop.permute.xlu1 %770  ;;  %v861_v28 = vpop.permute.xlu0 %860 }
 0x29b   : > { %2256 = vmatpush3.xpose.msk.msra.mxu0 %vm772_vm4, %v771_v26 }
 0x29c   : > { %2260 = vmatprep.subr.mxu0 %v2478_v9 }
 0x29e   : > { %2258 = vmatmul.mubr.msk.f32.vlgmr.msra.gmra.mxu0 %vm772_vm4, %v2706_v27 }
 0x29f   : > { %2261 = vmatpush3.msk.msra.mxu0 %vm866_vm5, %v861_v28  ;;  %2262 = vmatprep.mubr.msk.f32.mxu0 %vm2479_vm2, %v2478_v9 }
 0x2a0   : > { %2265 = vmatprep.subr.mxu0 %v2478_v9 }
 0x35e   : > { %v844_v29 = vpop.f32.mrf.mxu0 }
 0x35f   : > { %v849_v30 = vsel %vm848_vm6, %v844_v29, -inf }
 0x360   : > { %850 = vmax.xlane.f32.xlu1 %v849_v30  ;;  %v2259_v31 = vpop.f32.mrf.mxu0 }
 0x361   : > { %v768_v31 = vld [vmem:[%s2621_s0 + $0x18] sm:$0xff] }
 0x3e9   : > { %v851_v32 = vpop.xlane.xlu1 %850 }
 0x3ea   : > { %v852_v33 = vsub.f32 %v844_v29, %v851_v32 }
 0x3ec   : > { %v853_v34 = vmul.f32 1.442695, %v852_v33 }
 0x3ee   : > { %2416 = vpow2.f32 %v853_v34 }
 0x3fb   : > { %v2417_v35 = vpop.eup %2416 }
 0x3fc   : > { %v855_v36 = vsel %vm848_vm6, %v2417_v35, 0.0 }
 0x3fd   : > { %856 = vadd.xlane.f32.xlu0 %v855_v36 }
 0x413   : > { %941 = vrot.lane.b32.xlu0 %v2700_v24, %s2482_s27  ;;  %s2918_s27 = scalar_lea.vmem %s2885_s8, %s2595_s15 }
 0x417   : > { %939 = vrot.lane.b32.xlu0 %v2706_v27, %s2483_s28 }
 0x486   : > { %v857_v37 = vpop.xlane.xlu0 %856 }
 0x487   : > { %2418 = vrcp.f32 %v857_v37 }
 0x48a   : > { %v942_v39 = vpop.permute.xlu0 %941 }
 0x48e   : > { %v940_v41 = vpop.permute.xlu0 %939 }
 0x494   : > { %v2419_v38 = vpop.eup %2418 }
 0x495   : > { %v859_v40 = vmul.f32 %v2419_v38, %v2417_v35 }
 0x497   : > { %2263 = vmatmul.mubr.msk.f32.vlgmr.msra.gmra.mxu0 %vm862_vm7, %v859_v40 }
 0x498   : > { %2266 = vmatpush3.xpose.msk.msra.mxu0 %vm772_vm4, %v942_v39  ;;  %2267 = vmatprep.mubr.msk.f32.mxu0 %vm2479_vm2, %v2478_v9 }
 0x499   : > { %2270 = vmatprep.subr.mxu0 %v2478_v9 }
 0x49b   : > { %2268 = vmatmul.mubr.msk.f32.vlgmr.msra.gmra.mxu0 %vm772_vm4, %v940_v41 }
 0x49c   : > { %2272 = vmatprep.mubr.msk.f32.mxu0 %vm2479_vm2, %v2478_v9 }
 0x557   : > { %v935_v43 = vpop.f32.mrf.mxu0 }
 0x558   : > { %2283 = vmatmul.mubr.msk.f32.vlgmr.msra.gmra.mxu1 %vm772_vm4, %v935_v43 }
 0x559   : > { %v2264_v44 = vpop.f32.mrf.mxu0  ;;  %2292 = vmatprep.mubr.msk.f32.mxu1 %vm2479_vm2, %v2478_v9 }
 0x55b   : > { %v1013_v45 = vpop.f32.mrf.mxu0 }
 0x55c   : > { %v1017_v46 = vsel %vm848_vm6, %v1013_v45, -inf }
 0x55d   : > { %1018 = vmax.xlane.f32.xlu1 %v1017_v46  ;;  %v2269_v47 = vpop.f32.mrf.mxu0 }
 0x56e   : > { %1028 = vrot.lane.b32.xlu1 %v2700_v24, %s2484_s30 }
 0x572   : > { %1253 = vrot.lane.b32.xlu1 %v2700_v24, %s2485_s3 }
 0x576   : > { %1251 = vrot.lane.b32.xlu1 %v2706_v27, %s2486_s5 }
 0x5e6   : > { %v1019_v48 = vpop.xlane.xlu1 %1018 }
 0x5e7   : > { %v1020_v49 = vsub.f32 %v1013_v45, %v1019_v48 }
 0x5e9   : > { %v1021_v50 = vmul.f32 1.442695, %v1020_v49 }
 0x5ea   : > { %v1029_v51 = vpop.permute.xlu1 %1028 }
 0x5eb   : > { %2420 = vpow2.f32 %v1021_v50  ;;  %2271 = vmatpush3.msk.msra.mxu0 %vm866_vm5, %v1029_v51 }
 0x5ec   : > { %2275 = vmatprep.subr.mxu0 %v2478_v9 }
 0x5ee   : > { %v1254_v61 = vpop.permute.xlu1 %1253 }
 0x5f2   : > { %v1252_v0 = vpop.permute.xlu1 %1251 }
 0x5f8   : > { %v2421_v52 = vpop.eup %2420 }
 0x5f9   : > { %v1023_v53 = vsel %vm848_vm6, %v2421_v52, 0.0 }
 0x5fa   : > { %1024 = vadd.xlane.f32.xlu0 %v1023_v53  ;;  %v1771_v53 = vld [vmem:[%s2638_s26 + $0x10] sm:$0xff] }
 0x610   : > { %1340 = vrot.lane.b32.xlu0 %v2700_v24, %s2487_s16 }
 0x618   : > { %v2740_v54 = vpop.f32.mrf.mxu1 }
 0x61a   : > { %v2284_v55 = vpop.f32.mrf.mxu1 }
 0x683   : > { %v1025_v56 = vpop.xlane.xlu0 %1024 }
 0x684   : > { %2422 = vrcp.f32 %v1025_v56 }
 0x687   : > { %v1341_v57 = vpop.permute.xlu0 %1340 }
 0x688   : > { %2291 = vmatpush3.msk.msra.mxu1 %vm866_vm5, %v1341_v57 }
 0x689   : > { %2300 = vmatprep.subr.mxu1 %v2478_v9 }
 0x691   : > { %v2423_v58 = vpop.eup %2422 }
 0x692   : > { %v1027_v59 = vmul.f32 %v2423_v58, %v2421_v52  ;;  %v1772_v52 = vld [vmem:[%s2638_s26 + $0x18] sm:$0xff] }
 0x694   : > { %2273 = vmatmul.mubr.msk.f32.vlgmr.msra.gmra.mxu0 %vm862_vm7, %v1027_v59  ;;  %v2181_v59 = vld [vmem:[%s2917_s14] ss:$0 sm:$0xff] }
 0x695   : > { %2276 = vmatpush3.msra.mxu0 %v766_v60  ;;  %2277 = vmatprep.mubr.msk.f32.mxu0 %vm2479_vm2, %v2478_v9 }
 0x696   : > { %2285 = vmatprep.subr.mxu0 %v2478_v9 }
 0x754   : > { %v1101_v62 = vpop.f32.mrf.mxu0 }
 0x755   : > { %2278 = vmatmul.mubr.msk.f32.vlgmr.msra.gmra.mxu0 %vm772_vm4, %v1101_v62 }
 0x756   : > { %2286 = vmatpush3.xpose.msk.msra.mxu0 %vm772_vm4, %v1254_v61  ;;  %v2274_v63 = vpop.f32.mrf.mxu0  ;;  %2287 = vmatprep.mubr.msk.f32.mxu0 %vm2479_vm2, %v2478_v9  ;;  %v2182_v61 = vld [vmem:[%s2918_s27] ss:$0 sm:$0xff] }
 0x757   : > { %2295 = vmatprep.subr.mxu0 %v2478_v9 }
 0x759   : > { %2288 = vmatmul.mubr.msk.f32.vlgmr.msra.gmra.mxu0 %vm772_vm4, %v1252_v0  ;;  %v1876_v0 = vld [vmem:[%s2652_s22 + $0x78] sm:$0xff] }
 0x75a   : > { %2297 = vmatprep.mubr.msk.f32.mxu0 %vm2479_vm2, %v2478_v9  ;;  %2296 = vmatpush3.msra.mxu0 %v767_v18  ;;  %v2183_v18 = vld [vmem:[%s627_s13] ss:$0 sm:$0xff] }
 0x75b   : > { %2305 = vmatprep.subr.mxu0 %v2478_v9 }
 0x815   : > { %v1174_v2 = vpop.f32.mrf.mxu0 }
 0x816   : > { %v1248_v32 = vadd.f32 %v2740_v54, %v1174_v2  ;;  %v1769_v54 = vld [vmem:[%s2638_s26] sm:$0xff]  ;;  %v1875_v2 = vld [vmem:[%s2652_s22 + $0x70] sm:$0xff] }
 0x817   : > { %v2279_v3 = vpop.f32.mrf.mxu0 }
 0x818   : > { %v1874_v3 = vld [vmem:[%s2652_s22 + $0x68] sm:$0xff] }
 0x819   : > { %v1325_v4 = vpop.f32.mrf.mxu0 }
 0x81a   : > { %v1329_v5 = vsel %vm848_vm6, %v1325_v4, -inf }
 0x81b   : > { %1330 = vmax.xlane.f32.xlu1 %v1329_v5  ;;  %v2289_v6 = vpop.f32.mrf.mxu0  ;;  %v1872_v5 = vld [vmem:[%s2652_s22 + $0x58] sm:$0xff] }
 0x81c   : > { %v1871_v6 = vld [vmem:[%s2652_s22 + $0x50] sm:$0xff] }
 0x8a4   : > { %v1331_v7 = vpop.xlane.xlu1 %1330 }
 0x8a5   : > { %v1332_v8 = vsub.f32 %v1325_v4, %v1331_v7  ;;  %v1873_v4 = vld [vmem:[%s2652_s22 + $0x60] sm:$0xff]  ;;  %v1870_v7 = vld [vmem:[%s2652_s22 + $0x48] sm:$0xff] }
 0x8a7   : > { %v1333_v10 = vmul.f32 1.442695, %v1332_v8  ;;  %v1869_v8 = vld [vmem:[%s2652_s22 + $0x40] sm:$0xff] }
 0x8a9   : > { %2424 = vpow2.f32 %v1333_v10  ;;  %v1868_v10 = vld [vmem:[%s2652_s22 + $0x38] sm:$0xff] }
 0x8b6   : > { %v2425_v11 = vpop.eup %2424 }
 0x8b7   : > { %v1335_v12 = vsel %vm848_vm6, %v2425_v11, 0.0 }
 0x8b8   : > { %1336 = vadd.xlane.f32.xlu0 %v1335_v12  ;;  %v1866_v12 = vld [vmem:[%s2652_s22 + $0x28] sm:$0xff] }
 0x8ce   : > { %1493 = vrot.lane.b32.xlu0 %v2700_v24, %s2488_s19 }
 0x8d2   : > { %1491 = vrot.lane.b32.xlu0 %v2706_v27, %s2489_s29 }
 0x941   : > { %v1337_v13 = vpop.xlane.xlu0 %1336 }
 0x942   : > { %2426 = vrcp.f32 %v1337_v13  ;;  %v1865_v13 = vld [vmem:[%s2652_s22 + $0x20] sm:$0xff] }
 0x945   : > { %v1494_v15 = vpop.permute.xlu0 %1493 }
 0x949   : > { %v1492_v17 = vpop.permute.xlu0 %1491 }
 0x94f   : > { %v2427_v14 = vpop.eup %2426 }
 0x950   : > { %v1339_v16 = vmul.f32 %v2427_v14, %v2425_v11  ;;  %v1867_v11 = vld [vmem:[%s2652_s22 + $0x30] sm:$0xff]  ;;  %v1864_v14 = vld [vmem:[%s2652_s22 + $0x18] sm:$0xff] }
 0x952   : > { %2293 = vmatmul.mubr.msk.f32.vlgmr.msra.gmra.mxu1 %vm862_vm7, %v1339_v16  ;;  %v1862_v16 = vld [vmem:[%s2652_s22 + $0x8] sm:$0xff] }
 0x953   : > { %2301 = vmatpush3.xpose.msk.msra.mxu1 %vm772_vm4, %v1494_v15  ;;  %2302 = vmatprep.mubr.msk.f32.mxu1 %vm2479_vm2, %v2478_v9  ;;  %v1863_v15 = vld [vmem:[%s2652_s22 + $0x10] sm:$0xff] }
 0x954   : > { %2310 = vmatprep.subr.mxu1 %v2478_v9 }
 0x956   : > { %2303 = vmatmul.mubr.msk.f32.vlgmr.msra.gmra.mxu1 %vm772_vm4, %v1492_v17  ;;  %v1861_v17 = vld [vmem:[%s2652_s22] sm:$0xff] }
 0x957   : > { %2312 = vmatprep.mubr.msk.f32.mxu1 %vm2479_vm2, %v2478_v9  ;;  %2311 = vmatpush3.msra.mxu1 %v768_v31 }
 0x958   : > { %2326 = vmatprep.subr.mxu1 %v2478_v9 }
 0xa12   : > { %v1413_v19 = vpop.f32.mrf.mxu1 }
 0xa13   : > { %2298 = vmatmul.mubr.msk.f32.vlgmr.msra.gmra.mxu0 %vm772_vm4, %v1413_v19 }
 0xa14   : > { %v2294_v20 = vpop.f32.mrf.mxu1  ;;  %2307 = vmatprep.mubr.msk.f32.mxu0 %vm2479_vm2, %v2478_v9 }
 0xa16   : > { %v1565_v21 = vpop.f32.mrf.mxu1 }
 0xa17   : > { %v1569_v22 = vsel %vm848_vm6, %v1565_v21, -inf }
 0xa18   : > { %1570 = vmax.xlane.f32.xlu1 %v1569_v22  ;;  %v2304_v23 = vpop.f32.mrf.mxu1 }
 0xa29   : > { %1580 = vrot.lane.b32.xlu1 %v2700_v24, %s2490_s25 }
 0xaa1   : > { %v1571_v25 = vpop.xlane.xlu1 %1570 }
 0xaa2   : > { %v1572_v26 = vsub.f32 %v1565_v21, %v1571_v25 }
 0xaa4   : > { %v1573_v27 = vmul.f32 1.442695, %v1572_v26 }
 0xaa5   : > { %v1581_v28 = vpop.permute.xlu1 %1580 }
 0xaa6   : > { %2428 = vpow2.f32 %v1573_v27  ;;  %2306 = vmatpush3.msk.msra.mxu0 %vm866_vm5, %v1581_v28 }
 0xaa7   : > { %2315 = vmatprep.subr.mxu0 %v2478_v9 }
 0xab3   : > { %v2429_v29 = vpop.eup %2428 }
 0xab4   : > { %v1575_v30 = vsel %vm848_vm6, %v2429_v29, 0.0 }
 0xab5   : > { %1576 = vadd.xlane.f32.xlu0 %v1575_v30 }
 0xad3   : > { %v1486_v24 = vpop.f32.mrf.mxu0 }
 0xad4   : > { %v1490_v33 = vadd.f32 %v1486_v24, %v1248_v32 }
 0xad5   : > { %v2299_v34 = vpop.f32.mrf.mxu0 }
 0xb3e   : > { %v1577_v35 = vpop.xlane.xlu0 %1576 }
 0xb3f   : > { %2430 = vrcp.f32 %v1577_v35 }
 0xb4c   : > { %v2431_v36 = vpop.eup %2430 }
 0xb4d   : > { %v1579_v37 = vmul.f32 %v2431_v36, %v2429_v29 }
 0xb4f   : > { %2308 = vmatmul.mubr.msk.f32.vlgmr.msra.gmra.mxu0 %vm862_vm7, %v1579_v37 }
 0xb50   : > { %2323 = vmatprep.mubr.msk.f32.mxu0 %vm2479_vm2, %v2478_v9  ;;  %2316 = vmatpush3.msra.mxu0 %v1772_v52 }
 0xb51   : > { %2317 = vmatprep.subr.mxu0 %v2478_v9 }
 0xb52   : > { %2318 = vmatpush3.msra.mxu0 %v1771_v53 }
 0xb53   : > { %2319 = vmatprep.subr.mxu0 %v2478_v9 }
 0xc0f   : > { %v1653_v38 = vpop.f32.mrf.mxu0 }
 0xc10   : > { %2313 = vmatmul.mubr.msk.f32.vlgmr.msra.gmra.mxu1 %vm772_vm4, %v1653_v38 }
 0xc11   : > { %v2309_v39 = vpop.f32.mrf.mxu0  ;;  %2358 = vmatprep.mubr.msk.f32.mxu1 %vm2479_vm2, %v2478_v9  ;;  %2327 = vmatpush3.msra.mxu1 %v1876_v0 }
 0xc12   : > { %2328 = vmatprep.subr.mxu1 %v2478_v9 }
 0xc13   : > { %2329 = vmatpush3.msra.mxu1 %v1875_v2 }
 0xc14   : > { %2330 = vmatprep.subr.mxu1 %v2478_v9 }
 0xc15   : > { %2331 = vmatpush3.msra.mxu1 %v1874_v3 }
 0xc16   : > { %2332 = vmatprep.subr.mxu1 %v2478_v9 }
 0xc17   : > { %2333 = vmatpush3.msra.mxu1 %v1873_v4 }
 0xc18   : > { %2334 = vmatprep.subr.mxu1 %v2478_v9 }
 0xc19   : > { %2335 = vmatpush3.msra.mxu1 %v1872_v5 }
 0xc1a   : > { %2336 = vmatprep.subr.mxu1 %v2478_v9 }
 0xc1b   : > { %2337 = vmatpush3.msra.mxu1 %v1871_v6 }
 0xc1c   : > { %2338 = vmatprep.subr.mxu1 %v2478_v9 }
 0xc1d   : > { %2339 = vmatpush3.msra.mxu1 %v1870_v7 }
 0xc1e   : > { %2340 = vmatprep.subr.mxu1 %v2478_v9 }
 0xc1f   : > { %2341 = vmatpush3.msra.mxu1 %v1869_v8 }
 0xc20   : > { %2342 = vmatprep.subr.mxu1 %v2478_v9 }
 0xc21   : > { %2343 = vmatpush3.msra.mxu1 %v1868_v10 }
 0xc22   : > { %2344 = vmatprep.subr.mxu1 %v2478_v9 }
 0xc23   : > { %2345 = vmatpush3.msra.mxu1 %v1867_v11 }
 0xc24   : > { %2346 = vmatprep.subr.mxu1 %v2478_v9 }
 0xc25   : > { %2347 = vmatpush3.msra.mxu1 %v1866_v12 }
 0xc26   : > { %2348 = vmatprep.subr.mxu1 %v2478_v9 }
 0xc27   : > { %2349 = vmatpush3.msra.mxu1 %v1865_v13 }
 0xc28   : > { %2350 = vmatprep.subr.mxu1 %v2478_v9 }
 0xc29   : > { %2351 = vmatpush3.msra.mxu1 %v1864_v14 }
 0xc2a   : > { %2352 = vmatprep.subr.mxu1 %v2478_v9 }
 0xc2b   : > { %2353 = vmatpush3.msra.mxu1 %v1863_v15 }
 0xc2c   : > { %2354 = vmatprep.subr.mxu1 %v2478_v9 }
 0xc2d   : > { %2355 = vmatpush3.msra.mxu1 %v1862_v16 }
 0xc2e   : > { %2356 = vmatprep.subr.mxu1 %v2478_v9 }
 0xc2f   : > { %2357 = vmatpush3.msra.mxu1 %v1861_v17 }
 0xcd0   : > { %v1726_v40 = vpop.f32.mrf.mxu1 }
 0xcd1   : > { %v1730_v41 = vadd.f32 %v1726_v40, %v1490_v33 }
 0xcd2   : > { %v2314_v43 = vpop.f32.mrf.mxu1 }
 0xcd3   : > { %v1731_v44 = vadd.f32 %v1730_v41, %v2662_v1  ;;  %v1770_v1 = vld [vmem:[%s2638_s26 + $0x8] sm:$0xff] }
 0xcd4   : > { %2320 = vmatpush3.msra.mxu0 %v1770_v1 }
 0xcd5   : > { %v2794_v45 = vadd.f32 %v2180_v42, %v1731_v44  ;;  %2321 = vmatprep.subr.mxu0 %v2478_v9  ;;  %v2186_v9 = vld [vmem:[%s635_s23] ss:$0 sm:$0xff] }
 0xcd6   : > { %2322 = vmatpush3.msra.mxu0 %v1769_v54 }
 0xcd7   : > { %v1742_v46 = vsel %vm650_vm1, %v2794_v45, 0.0 }
 0xcd8   : > { %1743 = vadd.xlane.f32.xlu1 %v1742_v46 }
 0xd61   : > { %v1744_v47 = vpop.xlane.xlu1 %1743 }
 0xd62   : > { %v1745_v48 = vmul.f32 0.03125, %v1744_v47 }
 0xd64   : > { %v1746_v49 = vsub.f32 %v2794_v45, %v1745_v48 }
 0xd66   : > { %v1747_v50 = vmul.f32 %v1746_v49, %v1746_v49 }
 0xd68   : > { %v1748_v51 = vsel %vm650_vm1, %v1747_v50, 0.0 }
 0xd69   : > { %1749 = vadd.xlane.f32.xlu0 %v1748_v51 }
 0xdf2   : > { %v1750_v55 = vpop.xlane.xlu0 %1749 }
 0xdf3   : > { %v1751_v56 = vmul.f32 0.03125, %v1750_v55 }
 0xdf5   : > { %v1752_v57 = vadd.f32 1e-05, %v1751_v56 }
 0xdf7   : > { %2432 = vrsqrt.f32 %v1752_v57 }
 0xe04   : > { %v2433_v58 = vpop.eup %2432 }
 0xe05   : > { %v1754_v60 = vmul.f32 %v2433_v58, %v1746_v49 }
 0xe07   : > { %v1761_v62 = vmul.f32 %v2181_v59, %v1754_v60 }
 0xe09   : > { %v1768_v63 = vadd.f32 %v2182_v61, %v1761_v62 }
 0xe0b   : > { %2324 = vmatmul.mubr.msk.f32.vlgmr.msra.gmra.mxu0 %vm690_vm3, %v1768_v63 }
 0xecb   : > { %v1849_v19 = vpop.f32.mrf.mxu0 }
 0xecc   : > { %v1850_v20 = vadd.f32 %v2183_v18, %v1849_v19 }
 0xecd   : > { %v2325_v21 = vpop.f32.mrf.mxu0 }
 0xece   : > { %v2185_v22 = vmul.f32 -1.702, %v1850_v20 }
 0xed0   : > { %v1855_v23 = vmul.f32 1.442695, %v2185_v22 }
 0xed2   : > { %2434 = vpow2.f32 %v1855_v23 }
 0xedf   : > { %v2435_v25 = vpop.eup %2434 }
 0xee0   : > { %v1857_v26 = vadd.f32 1.0, %v2435_v25 }
 0xee2   : > { %2436 = vrcp.f32 %v1857_v26 }
 0xeef   : > { %v2437_v27 = vpop.eup %2436 }
 0xef0   : > { %v1860_v28 = vmul.f32 %v2437_v27, %v1850_v20 }
 0xef2   : > { %2359 = vmatmul.mubr.f32.vlgmr.msra.gmra.mxu1 %v1860_v28 }
 0xfb2   : > { %v1950_v29 = vpop.f32.mrf.mxu1 }
 0xfb3   : > { %v1951_v30 = vadd.f32 %v2186_v9, %v1950_v29 }
 0xfb4   : > { %v2360_v31 = vpop.f32.mrf.mxu1 }
 0xfb5   : > { %v1954_v32 = vadd.f32 %v1951_v30, %v2794_v45 }
 0xfb7   : > { %1955 = vst.msk [vmem:[%s2657_s2] sm:$0x1f] %vm650_vm1, %v1954_v32 }
 0xfb8 PF: > { %s2919_s13 = sld [smem:[#allocation5_spill]] }
 0xfb9   : > { %s2920_s25 = sld [smem:[#allocation3_spill]] }
 0xfba   : > { %s2921_s26 = sld [smem:[#allocation4_spill]] }
 0xfbb   : > { %s2922_s27 = sld [smem:[#allocation6_spill]] }
 0xfbc   : > { %s2923_s28 = sld [smem:[#allocation7_spill]] }
 0xfbe   : > { %s23_s29 = sadd.s32 1, %s2919_s13  }
 0xfbf   : > { %p20_p8 = scmp.ge.s32.totalorder %s23_s29, 6  }
 0xfc1   :  { %22 = sbr.rel (!%p20_p8) target bundleno = 6 (0x6), region = 142 }

// kernel: _streetclip_forward.8
= control target key start
LH: loop header
LB: loop body
LE: loop exit
PB: predicated region body
PF: predicated region fallthrough
CT: control target
= control target key end

     0   :  { %s2555_s25 = smov 0   ;;  %s2557_s26 = smov 0   ;;  %s2874_s0 = inlined_call_operand.vmem [shape: f32[2,8,32], index: 0, kind: input, shape index: {}]   ;;  %s2875_s1 = inlined_call_operand.vmem [shape: f32[2,1,32], index: 1, kind: input, shape index: {}]   ;;  %s2876_s2 = inlined_call_operand.vmem [shape: f32[2,1,32], index: 2, kind: input, shape index: {}]   ;;  %s2877_s3 = inlined_call_operand.vmem [shape: f32[2,32,96], index: 3, kind: input, shape index: {}]   ;;  %s2878_s4 = inlined_call_operand.vmem [shape: f32[2,1,96], index: 4, kind: input, shape index: {}]   ;;  %s2879_s5 = inlined_call_operand.vmem [shape: f32[2,32,32], index: 5, kind: input, shape index: {}]   ;;  %s2880_s6 = inlined_call_operand.vmem [shape: f32[2,1,32], index: 6, kind: input, shape index: {}]   ;;  %s2881_s7 = inlined_call_operand.vmem [shape: f32[2,1,32], index: 7, kind: input, shape index: {}]   ;;  %s2882_s8 = inlined_call_operand.vmem [shape: f32[2,1,32], index: 8, kind: input, shape index: {}]   ;;  %s2883_s9 = inlined_call_operand.vmem [shape: f32[2,32,128], index: 9, kind: input, shape index: {}]   ;;  %s2884_s10 = inlined_call_operand.vmem [shape: f32[2,1,128], index: 10, kind: input, shape index: {}]   ;;  %s2885_s11 = inlined_call_operand.vmem [shape: f32[2,128,32], index: 11, kind: input, shape index: {}]   ;;  %s2886_s12 = inlined_call_operand.vmem [shape: f32[2,1,32], index: 12, kind: input, shape index: {}]   ;;  %s2887_s13 = inlined_call_operand.vmem [shape: f32[2,8,32], index: 13, kind: output, shape index: {}]  }
   0x1   :  { %2892 = sst [smem:[#allocation8_spill]] %s2874_s0  ;;  %s2559_s27 = smov 0  }
   0x2   :  { %2893 = sst [smem:[#allocation9_spill]] %s2876_s2  ;;  %s2561_s28 = smov 0  }
   0x3   :  { %2894 = sst [smem:[#allocation10_spill]] %s2877_s3  ;;  %s2563_s29 = smov 0  }
   0x4   :  { %2895 = sst [smem:[#allocation11_spill]] %s2879_s5 }
   0x5   :  { %2896 = sst [smem:[#allocation12_spill]] %s2887_s13 }
   0x6 LB: > { %2897 = sst [smem:[#allocation2_spill]] %s2454_s25  ;;  %s32_s30 = sadd.s32 1, %s2462_s27  ;;  %s2470_s29 = sphi %s2563_s29, %s23_s29   ;;  %s2466_s28 = sphi %s2561_s28, %s2920_s28   ;;  %s2462_s27 = sphi %s2559_s27, %s2919_s27   ;;  %s2458_s26 = sphi %s2557_s26, %s2918_s26   ;;  %s2454_s25 = sphi %s2555_s25, %s2917_s25  }
   0x7   : > { %2898 = sst [smem:[#allocation3_spill]] %s2462_s27  ;;  %s35_s14 = sadd.s32 1, %s2466_s28 }
   0x8   : > { %2899 = sst [smem:[#allocation4_spill]] %s2466_s28  ;;  %p33_p0 = scmp.ge.s32.totalorder %s32_s30, 2 }
   0x9   : > { %2900 = sst [smem:[#allocation5_spill]] %s2470_s29  ;;  %p2142_p1 = scmp.ge.s32.totalorder %s2470_s29, 1 }
   0xa   : > { %p502_p2 = scmp.lt.s32.totalorder %s2470_s29, 5  ;;  %s2922_s30 = smov (%p33_p0, %s32_s30), 0 }
   0xb   : > { %2901 = sst [smem:[#allocation6_spill]] %s2922_s30  ;;  %s2924_s14 = smov (!%p33_p0, %s35_s14), %s2466_s28 }
   0xc   : > { %p503_p3 = pnand %p2142_p1, %p502_p2  ;;  %p37_p4 = scmp.ge.s32.totalorder %s2924_s14, 2 }
   0xd   : > { %p588_p5 = scmp.lt.s32.totalorder (!%p503_p3), %s2458_s26, 1  ;;  %p592_p6 = scmp.lt.s32.totalorder (!%p503_p3), %s2454_s25, 1 }
   0xe   : > { %s2926_s14 = smov (%p37_p4, %s2924_s14), 0  ;;  %506 = sbr.rel (%p503_p3) target bundleno = 4032 (0xfc0), region = 72 }
   0xf   : > { %2902 = sst [smem:[#allocation7_spill]] %s2926_s14 }
  0x10   : > { %s2903_s0 = sld [smem:[#allocation8_spill]] (!%p503_p3) }
  0x11   : > { %s2905_s3 = sld [smem:[#allocation10_spill]] (!%p503_p3) }
  0x12   : > { %s2906_s5 = sld [smem:[#allocation11_spill]] (!%p503_p3) }
  0x13   : > { %s2928_s26 = smov (!%p588_p5, %s2458_s26), 1 }
  0x14   : > { %s2589_s15 = scalar_select %p592_p6, %s2454_s25, 1 }
  0x15   : > { %s2143_s16 = sshll.u32 %s2928_s26, 3 }
  0x16   : > { %s591_s19 = scalar_lea.vmem %s2903_s0, %s2143_s16  ;;  %s2183_s30 = sshll.u32 %s2589_s15, 5 }
  0x17   : > { %s2606_s29 = scalar_lea.vmem %s2905_s3, %s2183_s30  ;;  %s2632_s26 = scalar_lea.vmem %s2883_s9, %s2183_s30 }
  0x18   : > { %s2615_s0 = scalar_lea.vmem %s2906_s5, %s2183_s30  ;;  %s627_s13 = scalar_lea.vmem %s2884_s10, %s2589_s15 }
  0x19   : > { %s2186_s5 = sshll.u32 %s2589_s15, 7  ;;  %s635_s23 = scalar_lea.vmem %s2886_s12, %s2589_s15 }
  0x1a   : > { %s2646_s22 = scalar_lea.vmem %s2885_s11, %s2186_s5  ;;  %s2907_s3 = sld [smem:[#allocation12_spill]] }
  0x1b   : > { %s2908_s30 = sld [smem:[#allocation2_spill]] }
  0x20   : > { %s2651_s2 = scalar_lea.vmem %s2907_s3, %s2143_s16 }
  0x21   : > { %p2153_p7 = scmp.ne.s32.totalorder %s2908_s30, 0 }
  0x23   : > { %643 = sbr.rel (%p2153_p7) target bundleno = 42 (0x2a), region = 76 }
  0x28   : > { %v644_v0 = vld [vmem:[%s591_s19] sm:$0xff]  ;;  %vm645_vm0 = vcmask 261120  }
  0x29   : > { %646 = vst.msk [vmem:[%s2651_s2] sm:$0xff] %vm645_vm0, %v644_v0 }
  0x2a PF: > { %vm650_vm1 = vcmask 261120   ;;  %v682_v8 = vld [vmem:[%s2606_s29 + $0x18] sm:$0xff]  ;;  %v2472_v9 = vmov 0.0   ;;  %v681_v10 = vld [vmem:[%s2606_s29 + $0x10] sm:$0xff]  ;;  %vm2473_vm2 = vmmov 0   ;;  %v680_v11 = vld [vmem:[%s2606_s29 + $0x8] sm:$0xff]  ;;  %s2909_s16 = scalar_lea.vmem %s2875_s1, %s2589_s15  ;;  %s2912_s21 = scalar_lea.vmem %s2878_s4, %s2589_s15  ;;  %v764_v29 = vlaneseq }
  0x2b   : > { %2238 = vmatprep.subr.mxu0 %v2472_v9  ;;  %2246 = vmatprep.mubr.msk.f32.mxu0 %vm2473_vm2, %v2472_v9  ;;  %v679_v12 = vld [vmem:[%s2606_s29] sm:$0xff]  ;;  %s2910_s25 = sld [smem:[#allocation9_spill]]  ;;  %s2474_s14 = smov 64   ;;  %vm777_vm3 = vcmask 64512  }
  0x2c   : > { %2239 = vmatpush3.msra.mxu0 %v682_v8  ;;  %2274 = vmatprep.subr.mxu1 %v2472_v9  ;;  %v2154_v17 = vld [vmem:[%s2909_s16] ss:$0 sm:$0xff]  ;;  %s2475_s24 = smov 96   ;;  %v765_v30 = vshrl.u32 %v764_v29, 7  ;;  %v767_v31 = vand.u32 127, %v764_v29  ;;  %s2476_s27 = smov 88  }
  0x2d   : > { %2240 = vmatprep.subr.mxu0 %v2472_v9  ;;  %2276 = vmatprep.mubr.msk.f32.mxu1 %vm2473_vm2, %v2472_v9  ;;  %v2156_v22 = vld [vmem:[%s2912_s21] ss:$0 sm:$0xff]  ;;  %s2477_s28 = smov 120   ;;  %s2478_s30 = smov 56  }
  0x2e   : > { %2241 = vmatpush3.msra.mxu0 %v681_v10  ;;  %vm768_vm4 = vcmp.gt.s32.totalorder %v767_v31, %v765_v30  ;;  %v770_v47 = vld [vmem:[%s2615_s0] sm:$0xff]  ;;  %s2479_s3 = smov 80   ;;  %s2480_s5 = smov 112  }
  0x2f   : > { %2242 = vmatprep.subr.mxu0 %v2472_v9  ;;  %v2709_v32 = vsel %vm768_vm4, -1e+09, %v2472_v9  ;;  %2275 = vmatpush3.msra.mxu1 %v770_v47  ;;  %s2481_s16 = smov 48   ;;  %s2482_s19 = smov 72  }
  0x30   : > { %v2656_v1 = vld [vmem:[%s2651_s2] sm:$0xff]  ;;  %2243 = vmatpush3.msra.mxu0 %v680_v11  ;;  %2284 = vmatprep.subr.mxu1 %v2472_v9  ;;  %s2483_s29 = smov 104   ;;  %s2913_s18 = scalar_lea.vmem %s2880_s6, %s2589_s15 }
  0x31   : > { %v651_v2 = vsel %vm650_vm1, %v2656_v1, 0.0  ;;  %2244 = vmatprep.subr.mxu0 %v2472_v9  ;;  %s2911_s17 = scalar_lea.vmem %s2910_s25, %s2589_s15  ;;  %s2484_s25 = smov 40  }
  0x32   : > { %652 = vadd.xlane.f32.xlu0 %v651_v2  ;;  %2245 = vmatpush3.msra.mxu0 %v679_v12  ;;  %v2155_v19 = vld [vmem:[%s2911_s17] ss:$0 sm:$0xff] }
  0x33   : > { %2249 = vmatprep.subr.mxu0 %v2472_v9 }
  0xbb   : > { %v653_v3 = vpop.xlane.xlu0 %652 }
  0xbc   : > { %v655_v4 = vmul.f32 0.03125, %v653_v3  ;;  %v771_v3 = vld [vmem:[%s2615_s0 + $0x8] sm:$0xff] }
  0xbe   : > { %v656_v5 = vsub.f32 %v2656_v1, %v655_v4 }
  0xc0   : > { %v657_v6 = vmul.f32 %v656_v5, %v656_v5 }
  0xc2   : > { %v658_v7 = vsel %vm650_vm1, %v657_v6, 0.0 }
  0xc3   : > { %659 = vadd.xlane.f32.xlu0 %v658_v7 }
 0x14c   : > { %v660_v13 = vpop.xlane.xlu0 %659 }
 0x14d   : > { %v661_v14 = vmul.f32 0.03125, %v660_v13 }
 0x14f   : > { %v662_v15 = vadd.f32 1e-05, %v661_v14 }
 0x151   : > { %2408 = vrsqrt.f32 %v662_v15 }
 0x15e   : > { %v2409_v16 = vpop.eup %2408 }
 0x15f   : > { %v664_v18 = vmul.f32 %v2409_v16, %v656_v5 }
 0x161   : > { %v671_v20 = vmul.f32 %v2154_v17, %v664_v18 }
 0x163   : > { %v678_v21 = vadd.f32 %v2155_v19, %v671_v20 }
 0x165   : > { %2247 = vmatmul.mubr.msk.f32.vlgmr.msra.gmra.mxu0 %vm650_vm1, %v678_v21 }
 0x166   : > { %2251 = vmatprep.mubr.msk.f32.mxu0 %vm2473_vm2, %v2472_v9 }
 0x225   : > { %v759_v23 = vpop.f32.mrf.mxu0 }
 0x226   : > { %v2694_v24 = vadd.f32 %v2156_v22, %v759_v23 }
 0x227   : > { %v2248_v25 = vpop.f32.mrf.mxu0 }
 0x228   : > { %864 = vrot.lane.b32.xlu0 %v2694_v24, %s2474_s14  ;;  %775 = vrot.lane.b32.xlu1 %v2694_v24, %s2475_s24  ;;  %v2700_v27 = vmul.f32 0.35355338, %v2694_v24  ;;  %s2914_s14 = scalar_lea.vmem %s2881_s7, %s2589_s15 }
 0x29a   : > { %v776_v26 = vpop.permute.xlu1 %775  ;;  %v865_v28 = vpop.permute.xlu0 %864 }
 0x29b   : > { %2250 = vmatpush3.xpose.msk.msra.mxu0 %vm777_vm3, %v776_v26  ;;  %v772_v26 = vld [vmem:[%s2615_s0 + $0x10] sm:$0xff] }
 0x29c   : > { %2254 = vmatprep.subr.mxu0 %v2472_v9 }
 0x29e   : > { %2252 = vmatmul.mubr.msk.f32.vlgmr.msra.gmra.mxu0 %vm777_vm3, %v2700_v27 }
 0x29f   : > { %2255 = vmatpush3.msra.mxu0 %v865_v28  ;;  %2256 = vmatprep.mubr.msk.f32.mxu0 %vm2473_vm2, %v2472_v9 }
 0x2a0   : > { %2259 = vmatprep.subr.mxu0 %v2472_v9 }
 0x35e   : > { %v849_v33 = vpop.f32.mrf.mxu0 }
 0x35f   : > { %v850_v34 = vadd.f32 %v849_v33, %v2709_v32 }
 0x360   : > { %v2253_v35 = vpop.f32.mrf.mxu0 }
 0x361   : > { %v853_v36 = vsel %vm777_vm3, %v850_v34, -inf }
 0x362   : > { %854 = vmax.xlane.f32.xlu1 %v853_v36 }
 0x3eb   : > { %v855_v37 = vpop.xlane.xlu1 %854 }
 0x3ec   : > { %v856_v38 = vsub.f32 %v850_v34, %v855_v37 }
 0x3ee   : > { %v857_v39 = vmul.f32 1.442695, %v856_v38 }
 0x3f0   : > { %2410 = vpow2.f32 %v857_v39 }
 0x3fd   : > { %v2411_v40 = vpop.eup %2410 }
 0x3fe   : > { %v859_v41 = vsel %vm777_vm3, %v2411_v40, 0.0 }
 0x3ff   : > { %860 = vadd.xlane.f32.xlu0 %v859_v41 }
 0x415   : > { %942 = vrot.lane.b32.xlu0 %v2694_v24, %s2476_s27  ;;  %s2915_s27 = scalar_lea.vmem %s2882_s8, %s2589_s15 }
 0x419   : > { %940 = vrot.lane.b32.xlu0 %v2700_v27, %s2477_s28 }
 0x488   : > { %v861_v42 = vpop.xlane.xlu0 %860 }
 0x489   : > { %2412 = vrcp.f32 %v861_v42 }
 0x48c   : > { %v943_v44 = vpop.permute.xlu0 %942 }
 0x490   : > { %v941_v46 = vpop.permute.xlu0 %940 }
 0x496   : > { %v2413_v43 = vpop.eup %2412 }
 0x497   : > { %v863_v45 = vmul.f32 %v2413_v43, %v2411_v40 }
 0x499   : > { %2257 = vmatmul.mubr.msk.f32.vlgmr.msra.gmra.mxu0 %vm777_vm3, %v863_v45 }
 0x49a   : > { %2260 = vmatpush3.xpose.msk.msra.mxu0 %vm777_vm3, %v943_v44  ;;  %2261 = vmatprep.mubr.msk.f32.mxu0 %vm2473_vm2, %v2472_v9 }
 0x49b   : > { %2264 = vmatprep.subr.mxu0 %v2472_v9 }
 0x49d   : > { %2262 = vmatmul.mubr.msk.f32.vlgmr.msra.gmra.mxu0 %vm777_vm3, %v941_v46 }
 0x49e   : > { %2266 = vmatprep.mubr.msk.f32.mxu0 %vm2473_vm2, %v2472_v9 }
 0x559   : > { %v936_v48 = vpop.f32.mrf.mxu0 }
 0x55a   : > { %2277 = vmatmul.mubr.msk.f32.vlgmr.msra.gmra.mxu1 %vm777_vm3, %v936_v48 }
 0x55b   : > { %v2258_v49 = vpop.f32.mrf.mxu0  ;;  %2286 = vmatprep.mubr.msk.f32.mxu1 %vm2473_vm2, %v2472_v9 }
 0x55d   : > { %v1014_v50 = vpop.f32.mrf.mxu0 }
 0x55e   : > { %v1015_v51 = vadd.f32 %v1014_v50, %v2709_v32  ;;  %v2174_v50 = vld [vmem:[%s2913_s18] ss:$0 sm:$0xff] }
 0x55f   : > { %v2263_v52 = vpop.f32.mrf.mxu0 }
 0x560   : > { %v1018_v53 = vsel %vm777_vm3, %v1015_v51, -inf }
 0x561   : > { %1019 = vmax.xlane.f32.xlu1 %v1018_v53 }
 0x572   : > { %1029 = vrot.lane.b32.xlu1 %v2694_v24, %s2478_s30 }
 0x576   : > { %1253 = vrot.lane.b32.xlu1 %v2694_v24, %s2479_s3 }
 0x57a   : > { %1251 = vrot.lane.b32.xlu1 %v2700_v27, %s2480_s5 }
 0x5ea   : > { %v1020_v54 = vpop.xlane.xlu1 %1019 }
 0x5eb   : > { %v1021_v55 = vsub.f32 %v1015_v51, %v1020_v54 }
 0x5ed   : > { %v1022_v56 = vmul.f32 1.442695, %v1021_v55 }
 0x5ee   : > { %v1030_v57 = vpop.permute.xlu1 %1029 }
 0x5ef   : > { %2414 = vpow2.f32 %v1022_v56  ;;  %2265 = vmatpush3.msra.mxu0 %v1030_v57 }
 0x5f0   : > { %2269 = vmatprep.subr.mxu0 %v2472_v9 }
 0x5f2   : > { %v1254_v4 = vpop.permute.xlu1 %1253 }
 0x5f6   : > { %v1252_v7 = vpop.permute.xlu1 %1251 }
 0x5fc   : > { %v2415_v58 = vpop.eup %2414 }
 0x5fd   : > { %v1024_v59 = vsel %vm777_vm3, %v2415_v58, 0.0 }
 0x5fe   : > { %1025 = vadd.xlane.f32.xlu0 %v1024_v59 }
 0x614   : > { %1340 = vrot.lane.b32.xlu0 %v2694_v24, %s2481_s16 }
 0x61a   : > { %v2737_v60 = vpop.f32.mrf.mxu1 }
 0x61c   : > { %v2278_v61 = vpop.f32.mrf.mxu1 }
 0x61d   : > { %v1769_v61 = vld [vmem:[%s2632_s26 + $0x10] sm:$0xff] }
 0x687   : > { %v1026_v62 = vpop.xlane.xlu0 %1025 }
 0x688   : > { %2416 = vrcp.f32 %v1026_v62  ;;  %v1767_v62 = vld [vmem:[%s2632_s26] sm:$0xff] }
 0x68b   : > { %v1341_v63 = vpop.permute.xlu0 %1340 }
 0x68c   : > { %2285 = vmatpush3.msra.mxu1 %v1341_v63 }
 0x68d   : > { %2294 = vmatprep.subr.mxu1 %v2472_v9 }
 0x695   : > { %v2417_v0 = vpop.eup %2416 }
 0x696   : > { %v1028_v2 = vmul.f32 %v2417_v0, %v2415_v58 }
 0x698   : > { %2267 = vmatmul.mubr.msk.f32.vlgmr.msra.gmra.mxu0 %vm777_vm3, %v1028_v2 }
 0x699   : > { %2270 = vmatpush3.msra.mxu0 %v771_v3  ;;  %2271 = vmatprep.mubr.msk.f32.mxu0 %vm2473_vm2, %v2472_v9 }
 0x69a   : > { %2279 = vmatprep.subr.mxu0 %v2472_v9 }
 0x758   : > { %v1101_v5 = vpop.f32.mrf.mxu0 }
 0x759   : > { %2272 = vmatmul.mubr.msk.f32.vlgmr.msra.gmra.mxu0 %vm777_vm3, %v1101_v5 }
 0x75a   : > { %2280 = vmatpush3.xpose.msk.msra.mxu0 %vm777_vm3, %v1254_v4  ;;  %v2268_v6 = vpop.f32.mrf.mxu0  ;;  %2281 = vmatprep.mubr.msk.f32.mxu0 %vm2473_vm2, %v2472_v9  ;;  %v2175_v4 = vld [vmem:[%s2914_s14] ss:$0 sm:$0xff] }
 0x75b   : > { %2289 = vmatprep.subr.mxu0 %v2472_v9  ;;  %v2176_v6 = vld [vmem:[%s2915_s27] ss:$0 sm:$0xff] }
 0x75d   : > { %2282 = vmatmul.mubr.msk.f32.vlgmr.msra.gmra.mxu0 %vm777_vm3, %v1252_v7 }
 0x75e   : > { %2291 = vmatprep.mubr.msk.f32.mxu0 %vm2473_vm2, %v2472_v9  ;;  %2290 = vmatpush3.msra.mxu0 %v772_v26  ;;  %v1859_v26 = vld [vmem:[%s2646_s22] sm:$0xff] }
 0x75f   : > { %2299 = vmatprep.subr.mxu0 %v2472_v9 }
 0x819   : > { %v1174_v8 = vpop.f32.mrf.mxu0 }
 0x81a   : > { %v1248_v40 = vadd.f32 %v2737_v60, %v1174_v8  ;;  %v1770_v60 = vld [vmem:[%s2632_s26 + $0x18] sm:$0xff] }
 0x81b   : > { %v2273_v10 = vpop.f32.mrf.mxu0 }
 0x81c   : > { %v1874_v10 = vld [vmem:[%s2646_s22 + $0x78] sm:$0xff] }
 0x81d   : > { %v1325_v11 = vpop.f32.mrf.mxu0 }
 0x81e   : > { %v1326_v12 = vadd.f32 %v1325_v11, %v2709_v32  ;;  %v1873_v11 = vld [vmem:[%s2646_s22 + $0x70] sm:$0xff] }
 0x81f   : > { %v2283_v13 = vpop.f32.mrf.mxu0 }
 0x820   : > { %v1329_v14 = vsel %vm777_vm3, %v1326_v12, -inf  ;;  %v1871_v13 = vld [vmem:[%s2646_s22 + $0x60] sm:$0xff] }
 0x821   : > { %1330 = vmax.xlane.f32.xlu1 %v1329_v14  ;;  %v1870_v14 = vld [vmem:[%s2646_s22 + $0x58] sm:$0xff] }
 0x8aa   : > { %v1331_v15 = vpop.xlane.xlu1 %1330 }
 0x8ab   : > { %v1332_v16 = vsub.f32 %v1326_v12, %v1331_v15  ;;  %v1872_v12 = vld [vmem:[%s2646_s22 + $0x68] sm:$0xff]  ;;  %v1869_v15 = vld [vmem:[%s2646_s22 + $0x50] sm:$0xff] }
 0x8ad   : > { %v1333_v17 = vmul.f32 1.442695, %v1332_v16  ;;  %v1868_v16 = vld [vmem:[%s2646_s22 + $0x48] sm:$0xff] }
 0x8af   : > { %2418 = vpow2.f32 %v1333_v17  ;;  %v1867_v17 = vld [vmem:[%s2646_s22 + $0x40] sm:$0xff] }
 0x8bc   : > { %v2419_v18 = vpop.eup %2418 }
 0x8bd   : > { %v1335_v19 = vsel %vm777_vm3, %v2419_v18, 0.0 }
 0x8be   : > { %1336 = vadd.xlane.f32.xlu0 %v1335_v19  ;;  %v1865_v19 = vld [vmem:[%s2646_s22 + $0x30] sm:$0xff] }
 0x8d4   : > { %1492 = vrot.lane.b32.xlu0 %v2694_v24, %s2482_s19 }
 0x8d8   : > { %1490 = vrot.lane.b32.xlu0 %v2700_v27, %s2483_s29 }
 0x947   : > { %v1337_v20 = vpop.xlane.xlu0 %1336 }
 0x948   : > { %2420 = vrcp.f32 %v1337_v20  ;;  %v1864_v20 = vld [vmem:[%s2646_s22 + $0x28] sm:$0xff] }
 0x94b   : > { %v1493_v22 = vpop.permute.xlu0 %1492 }
 0x94f   : > { %v1491_v25 = vpop.permute.xlu0 %1490 }
 0x955   : > { %v2421_v21 = vpop.eup %2420 }
 0x956   : > { %v1339_v23 = vmul.f32 %v2421_v21, %v2419_v18  ;;  %v1866_v18 = vld [vmem:[%s2646_s22 + $0x38] sm:$0xff]  ;;  %v1863_v21 = vld [vmem:[%s2646_s22 + $0x20] sm:$0xff] }
 0x958   : > { %2287 = vmatmul.mubr.msk.f32.vlgmr.msra.gmra.mxu1 %vm777_vm3, %v1339_v23  ;;  %v1861_v23 = vld [vmem:[%s2646_s22 + $0x10] sm:$0xff] }
 0x959   : > { %2295 = vmatpush3.xpose.msk.msra.mxu1 %vm777_vm3, %v1493_v22  ;;  %2296 = vmatprep.mubr.msk.f32.mxu1 %vm2473_vm2, %v2472_v9  ;;  %v1862_v22 = vld [vmem:[%s2646_s22 + $0x18] sm:$0xff] }
 0x95a   : > { %2304 = vmatprep.subr.mxu1 %v2472_v9 }
 0x95c   : > { %2297 = vmatmul.mubr.msk.f32.vlgmr.msra.gmra.mxu1 %vm777_vm3, %v1491_v25  ;;  %v1860_v25 = vld [vmem:[%s2646_s22 + $0x8] sm:$0xff] }
 0x95d   : > { %2306 = vmatprep.mubr.msk.f32.mxu1 %vm2473_vm2, %v2472_v9 }
 0xa18   : > { %v1412_v27 = vpop.f32.mrf.mxu1 }
 0xa19   : > { %2292 = vmatmul.mubr.msk.f32.vlgmr.msra.gmra.mxu0 %vm777_vm3, %v1412_v27  ;;  %v2177_v27 = vld [vmem:[%s627_s13] ss:$0 sm:$0xff] }
 0xa1a   : > { %v2288_v28 = vpop.f32.mrf.mxu1  ;;  %2301 = vmatprep.mubr.msk.f32.mxu0 %vm2473_vm2, %v2472_v9 }
 0xa1c   : > { %v1564_v29 = vpop.f32.mrf.mxu1 }
 0xa1d   : > { %v1565_v30 = vadd.f32 %v1564_v29, %v2709_v32  ;;  %v773_v32 = vld [vmem:[%s2615_s0 + $0x18] sm:$0xff] }
 0xa1e   : > { %v2298_v31 = vpop.f32.mrf.mxu1  ;;  %2305 = vmatpush3.msra.mxu1 %v773_v32 }
 0xa1f   : > { %v1568_v33 = vsel %vm777_vm3, %v1565_v30, -inf  ;;  %2320 = vmatprep.subr.mxu1 %v2472_v9 }
 0xa20   : > { %1569 = vmax.xlane.f32.xlu1 %v1568_v33 }
 0xa31   : > { %1579 = vrot.lane.b32.xlu1 %v2694_v24, %s2484_s25 }
 0xaa9   : > { %v1570_v34 = vpop.xlane.xlu1 %1569 }
 0xaaa   : > { %v1571_v35 = vsub.f32 %v1565_v30, %v1570_v34 }
 0xaac   : > { %v1572_v36 = vmul.f32 1.442695, %v1571_v35 }
 0xaad   : > { %v1580_v37 = vpop.permute.xlu1 %1579 }
 0xaae   : > { %2422 = vpow2.f32 %v1572_v36  ;;  %2300 = vmatpush3.msra.mxu0 %v1580_v37 }
 0xaaf   : > { %2309 = vmatprep.subr.mxu0 %v2472_v9 }
 0xabb   : > { %v2423_v38 = vpop.eup %2422 }
 0xabc   : > { %v1574_v39 = vsel %vm777_vm3, %v2423_v38, 0.0 }
 0xabd   : > { %1575 = vadd.xlane.f32.xlu0 %v1574_v39 }
 0xad9   : > { %v1485_v41 = vpop.f32.mrf.mxu0 }
 0xada   : > { %v1489_v24 = vadd.f32 %v1485_v41, %v1248_v40 }
 0xadb   : > { %v2293_v42 = vpop.f32.mrf.mxu0 }
 0xb46   : > { %v1576_v43 = vpop.xlane.xlu0 %1575 }
 0xb47   : > { %2424 = vrcp.f32 %v1576_v43 }
 0xb54   : > { %v2425_v44 = vpop.eup %2424 }
 0xb55   : > { %v1578_v45 = vmul.f32 %v2425_v44, %v2423_v38 }
 0xb57   : > { %2302 = vmatmul.mubr.msk.f32.vlgmr.msra.gmra.mxu0 %vm777_vm3, %v1578_v45 }
 0xb58   : > { %2317 = vmatprep.mubr.msk.f32.mxu0 %vm2473_vm2, %v2472_v9  ;;  %2310 = vmatpush3.msra.mxu0 %v1770_v60 }
 0xb59   : > { %2311 = vmatprep.subr.mxu0 %v2472_v9 }
 0xb5a   : > { %2312 = vmatpush3.msra.mxu0 %v1769_v61 }
 0xb5b   : > { %2313 = vmatprep.subr.mxu0 %v2472_v9 }
 0xc17   : > { %v1651_v46 = vpop.f32.mrf.mxu0 }
 0xc18   : > { %2307 = vmatmul.mubr.msk.f32.vlgmr.msra.gmra.mxu1 %vm777_vm3, %v1651_v46 }
 0xc19   : > { %v2303_v47 = vpop.f32.mrf.mxu0  ;;  %2352 = vmatprep.mubr.msk.f32.mxu1 %vm2473_vm2, %v2472_v9  ;;  %2321 = vmatpush3.msra.mxu1 %v1874_v10 }
 0xc1a   : > { %2322 = vmatprep.subr.mxu1 %v2472_v9 }
 0xc1b   : > { %2323 = vmatpush3.msra.mxu1 %v1873_v11 }
 0xc1c   : > { %2324 = vmatprep.subr.mxu1 %v2472_v9 }
 0xc1d   : > { %2325 = vmatpush3.msra.mxu1 %v1872_v12 }
 0xc1e   : > { %2326 = vmatprep.subr.mxu1 %v2472_v9 }
 0xc1f   : > { %2327 = vmatpush3.msra.mxu1 %v1871_v13 }
 0xc20   : > { %2328 = vmatprep.subr.mxu1 %v2472_v9 }
 0xc21   : > { %2329 = vmatpush3.msra.mxu1 %v1870_v14 }
 0xc22   : > { %2330 = vmatprep.subr.mxu1 %v2472_v9 }
 0xc23   : > { %2331 = vmatpush3.msra.mxu1 %v1869_v15 }
 0xc24   : > { %2332 = vmatprep.subr.mxu1 %v2472_v9 }
 0xc25   : > { %2333 = vmatpush3.msra.mxu1 %v1868_v16 }
 0xc26   : > { %2334 = vmatprep.subr.mxu1 %v2472_v9 }
 0xc27   : > { %2335 = vmatpush3.msra.mxu1 %v1867_v17 }
 0xc28   : > { %2336 = vmatprep.subr.mxu1 %v2472_v9 }
 0xc29   : > { %2337 = vmatpush3.msra.mxu1 %v1866_v18 }
 0xc2a   : > { %2338 = vmatprep.subr.mxu1 %v2472_v9 }
 0xc2b   : > { %2339 = vmatpush3.msra.mxu1 %v1865_v19 }
 0xc2c   : > { %2340 = vmatprep.subr.mxu1 %v2472_v9 }
 0xc2d   : > { %2341 = vmatpush3.msra.mxu1 %v1864_v20 }
 0xc2e   : > { %2342 = vmatprep.subr.mxu1 %v2472_v9 }
 0xc2f   : > { %2343 = vmatpush3.msra.mxu1 %v1863_v21 }
 0xc30   : > { %2344 = vmatprep.subr.mxu1 %v2472_v9 }
 0xc31   : > { %2345 = vmatpush3.msra.mxu1 %v1862_v22 }
 0xc32   : > { %2346 = vmatprep.subr.mxu1 %v2472_v9 }
 0xc33   : > { %2347 = vmatpush3.msra.mxu1 %v1861_v23 }
 0xc34   : > { %2348 = vmatprep.subr.mxu1 %v2472_v9 }
 0xc35   : > { %2349 = vmatpush3.msra.mxu1 %v1860_v25 }
 0xc36   : > { %2350 = vmatprep.subr.mxu1 %v2472_v9 }
 0xc37   : > { %2351 = vmatpush3.msra.mxu1 %v1859_v26 }
 0xcd8   : > { %v1724_v48 = vpop.f32.mrf.mxu1 }
 0xcd9   : > { %v1728_v49 = vadd.f32 %v1724_v48, %v1489_v24 }
 0xcda   : > { %v2308_v51 = vpop.f32.mrf.mxu1 }
 0xcdb   : > { %v1729_v52 = vadd.f32 %v1728_v49, %v2656_v1  ;;  %v1768_v1 = vld [vmem:[%s2632_s26 + $0x8] sm:$0xff] }
 0xcdc   : > { %2314 = vmatpush3.msra.mxu0 %v1768_v1 }
 0xcdd   : > { %v2791_v53 = vadd.f32 %v2174_v50, %v1729_v52  ;;  %2315 = vmatprep.subr.mxu0 %v2472_v9  ;;  %v2180_v9 = vld [vmem:[%s635_s23] ss:$0 sm:$0xff] }
 0xcde   : > { %2316 = vmatpush3.msra.mxu0 %v1767_v62 }
 0xcdf   : > { %v1740_v54 = vsel %vm650_vm1, %v2791_v53, 0.0 }
 0xce0   : > { %1741 = vadd.xlane.f32.xlu1 %v1740_v54 }
 0xd69   : > { %v1742_v55 = vpop.xlane.xlu1 %1741 }
 0xd6a   : > { %v1743_v56 = vmul.f32 0.03125, %v1742_v55 }
 0xd6c   : > { %v1744_v57 = vsub.f32 %v2791_v53, %v1743_v56 }
 0xd6e   : > { %v1745_v58 = vmul.f32 %v1744_v57, %v1744_v57 }
 0xd70   : > { %v1746_v59 = vsel %vm650_vm1, %v1745_v58, 0.0 }
 0xd71   : > { %1747 = vadd.xlane.f32.xlu0 %v1746_v59 }
 0xdfa   : > { %v1748_v63 = vpop.xlane.xlu0 %1747 }
 0xdfb   : > { %v1749_v0 = vmul.f32 0.03125, %v1748_v63 }
 0xdfd   : > { %v1750_v2 = vadd.f32 1e-05, %v1749_v0 }
 0xdff   : > { %2426 = vrsqrt.f32 %v1750_v2 }
 0xe0c   : > { %v2427_v3 = vpop.eup %2426 }
 0xe0d   : > { %v1752_v5 = vmul.f32 %v2427_v3, %v1744_v57 }
 0xe0f   : > { %v1759_v7 = vmul.f32 %v2175_v4, %v1752_v5 }
 0xe11   : > { %v1766_v8 = vadd.f32 %v2176_v6, %v1759_v7 }
 0xe13   : > { %2318 = vmatmul.mubr.msk.f32.vlgmr.msra.gmra.mxu0 %vm650_vm1, %v1766_v8 }
 0xed3   : > { %v1847_v28 = vpop.f32.mrf.mxu0 }
 0xed4   : > { %v1848_v29 = vadd.f32 %v2177_v27, %v1847_v28 }
 0xed5   : > { %v2319_v30 = vpop.f32.mrf.mxu0 }
 0xed6   : > { %v2179_v31 = vmul.f32 -1.702, %v1848_v29 }
 0xed8   : > { %v1853_v33 = vmul.f32 1.442695, %v2179_v31 }
 0xeda   : > { %2428 = vpow2.f32 %v1853_v33 }
 0xee7   : > { %v2429_v34 = vpop.eup %2428 }
 0xee8   : > { %v1855_v35 = vadd.f32 1.0, %v2429_v34 }
 0xeea   : > { %2430 = vrcp.f32 %v1855_v35 }
 0xef7   : > { %v2431_v36 = vpop.eup %2430 }
 0xef8   : > { %v1858_v37 = vmul.f32 %v2431_v36, %v1848_v29 }
 0xefa   : > { %2353 = vmatmul.mubr.f32.vlgmr.msra.gmra.mxu1 %v1858_v37 }
 0xfba   : > { %v1948_v38 = vpop.f32.mrf.mxu1 }
 0xfbb   : > { %v1949_v39 = vadd.f32 %v2180_v9, %v1948_v38 }
 0xfbc   : > { %v2354_v32 = vpop.f32.mrf.mxu1 }
 0xfbd   : > { %v1952_v40 = vadd.f32 %v1949_v39, %v2791_v53 }
 0xfbf   : > { %1953 = vst.msk [vmem:[%s2651_s2] sm:$0xff] %vm650_vm1, %v1952_v40 }
 0xfc0 PF: > { %s2916_s13 = sld [smem:[#allocation5_spill]] }
 0xfc1   : > { %s2917_s25 = sld [smem:[#allocation3_spill]] }
 0xfc2   : > { %s2918_s26 = sld [smem:[#allocation4_spill]] }
 0xfc3   : > { %s2919_s27 = sld [smem:[#allocation6_spill]] }
 0xfc4   : > { %s2920_s28 = sld [smem:[#allocation7_spill]] }
 0xfc6   : > { %s23_s29 = sadd.s32 1, %s2916_s13  }
 0xfc7   : > { %p20_p8 = scmp.ge.s32.totalorder %s23_s29, 6  }
 0xfc9   :  { %22 = sbr.rel (!%p20_p8) target bundleno = 6 (0x6), region = 142 }

</bundles_post_ra>
